<compile_context>
chip_gen: v7x
topology: tpu7x:2x2x1
jax: 0.10.0
libtpu: 0.0.40
codegen_flags: <defaults>
</compile_context>

<pallas_src>
import functools
import math

import jax
import jax.numpy as jnp
from jax import lax
from jax.experimental import pallas as pl
from jax.experimental.pallas import tpu as pltpu


_LANE = 128
_SUBLANE = 8
_NEG_INF = -1e30


def _round_up(x, m):
    return (x + m - 1) // m * m


def _augce_kernel(reg_ref, x_ref, w_ref, b_ref, y_ref,
                  loss_ref, acc_ref,
                  ce_acc, corr_acc,
                  *, num_classes, batch, tile_b, compute_dtype):
    i = pl.program_id(0)
    n_steps = pl.num_programs(0)
    k_pad = w_ref.shape[1]

    @pl.when(i == 0)
    def _init():
        ce_acc[...] = jnp.zeros_like(ce_acc)
        corr_acc[...] = jnp.zeros_like(corr_acc)

    # ---- inner_model: linear classifier on the MXU ----
    x_mat = x_ref[...]
    w_mat = w_ref[...]
    if compute_dtype is not None:
        x_mat = x_mat.astype(compute_dtype)
        w_mat = w_mat.astype(compute_dtype)
    logits = jnp.dot(x_mat, w_mat, preferred_element_type=jnp.float32)
    logits = logits + b_ref[...].astype(jnp.float32)                   # (TB, Kpad)

    # mask padded class columns so they never win the max / feed the lse
    col = lax.broadcasted_iota(jnp.int32, (tile_b, k_pad), 1)
    logits = jnp.where(col < num_classes, logits, _NEG_INF)

    # ---- cross entropy pieces for this batch tile ----
    m = jnp.max(logits, axis=-1, keepdims=True)                        # (TB, 1)
    lse = m + jnp.log(jnp.sum(jnp.exp(logits - m), axis=-1, keepdims=True))
    y_mat = y_ref[...]                                                 # (TB, 1) int32
    true_logit = jnp.sum(jnp.where(col == y_mat, logits, 0.0),
                         axis=-1, keepdims=True)                       # (TB, 1)

    # mask padded batch rows (B not a multiple of the tile)
    row = i * tile_b + lax.broadcasted_iota(jnp.int32, (tile_b, 1), 0)
    valid = row < batch
    per_example = jnp.where(valid, lse - true_logit, 0.0)
    # NOTE: a sample ties-for-max counts as correct; torch.argmax picks the
    # first max index, which can differ only on exact logit ties.
    correct = jnp.where(valid & (true_logit >= m), 1.0, 0.0)

    ce_acc[...] += per_example
    corr_acc[...] += correct

    @pl.when(i == n_steps - 1)
    def _finalize():
        reg = reg_ref[0, 0]
        w_f32 = w_ref[...].astype(jnp.float32)
        b_f32 = b_ref[...].astype(jnp.float32)
        # zero padding of W / b contributes nothing to the sum of squares.
        sumsq = jnp.sum(w_f32 * w_f32) + jnp.sum(b_f32 * b_f32)
        inv_b = 1.0 / batch
        loss = jnp.sum(ce_acc[...]) * inv_b + 0.5 * reg * sumsq
        acc = jnp.sum(corr_acc[...]) * inv_b
        # lane-dense (1, 128) scalar slabs, read back as [0, 0] in the wrapper
        loss_ref[...] = jnp.full(loss_ref.shape, loss, dtype=loss_ref.dtype)
        acc_ref[...] = jnp.full(acc_ref.shape, acc, dtype=acc_ref.dtype)


def augce_forward(x_nchw, y, w, b, reg, *, with_acc=False, tile_b=256,
                  compute_dtype=None):
    """Pallas implementation of AugCE.forward((x, y), with_acc, 'mean', reg=True)."""
    B = x_nchw.shape[0]
    D = int(math.prod(x_nchw.shape[1:]))
    K = w.shape[1]

    # glue: flatten NCHW -> (B, D) in its *source* dtype (no f32 up-cast copy).
    x_flat = x_nchw.reshape(B, D)

    K_pad = _round_up(K, _LANE)
    TB = min(_round_up(B, _SUBLANE), _round_up(tile_b, _SUBLANE))
    B_pad = _round_up(B, TB)
    n_tiles = B_pad // TB

    if B_pad != B:
        x_flat = jnp.pad(x_flat, ((0, B_pad - B), (0, 0)))
        y_full = jnp.pad(y.astype(jnp.int32), (0, B_pad - B))
    else:
        y_full = y.astype(jnp.int32)
    y_col = y_full.reshape(B_pad, 1)

    w_pad = jnp.pad(w, ((0, 0), (0, K_pad - K))) if K_pad != K else w
    b_row = b.reshape(1, K)
    if K_pad != K:
        b_row = jnp.pad(b_row, ((0, 0), (0, K_pad - K)))

    reg_arr = jnp.full((1, 1), reg, dtype=jnp.float32)

    kernel = functools.partial(
        _augce_kernel, num_classes=K, batch=B, tile_b=TB,
        compute_dtype=compute_dtype)

    # explicit scoped-VMEM budget with headroom, capped below v7x's 64 MiB.
    x_tile_bytes = TB * D * x_flat.dtype.itemsize
    w_bytes = D * K_pad * w_pad.dtype.itemsize
    vmem_bytes = int(min(max(4 * x_tile_bytes + 2 * w_bytes + (2 << 20),
                             16 << 20),
                         48 << 20))

    loss_v, acc_v = pl.pallas_call(
        kernel,
        out_shape=(jax.ShapeDtypeStruct((1, _LANE), jnp.float32),
                   jax.ShapeDtypeStruct((1, _LANE), jnp.float32)),
        grid=(n_tiles,),
        in_specs=[
            pl.BlockSpec(memory_space=pltpu.MemorySpace.SMEM),   # reg scalar
            pl.BlockSpec((TB, D), lambda i: (i, 0)),             # x tile (streamed)
            pl.BlockSpec((D, K_pad), lambda i: (0, 0)),          # W (resident)
            pl.BlockSpec((1, K_pad), lambda i: (0, 0)),          # b (resident)
            pl.BlockSpec((TB, 1), lambda i: (i, 0)),             # int labels
        ],
        out_specs=(pl.BlockSpec((1, _LANE), lambda i: (0, 0)),
                   pl.BlockSpec((1, _LANE), lambda i: (0, 0))),
        scratch_shapes=[pltpu.VMEM((TB, 1), jnp.float32),        # CE-sum acc
                        pltpu.VMEM((TB, 1), jnp.float32)],       # correct acc
        compiler_params=pltpu.CompilerParams(
            dimension_semantics=("arbitrary",),
            vmem_limit_bytes=vmem_bytes),
    )(reg_arr, x_flat, w_pad, b_row, y_col)

    loss = loss_v[0, 0]
    if with_acc:
        return loss, acc_v[0, 0]
    return loss


def _augce_reference(x_nchw, y, w, b, reg):
    """Pure-JAX reference mirroring the PyTorch semantics."""
    B = x_nchw.shape[0]
    x_flat = x_nchw.reshape(B, -1).astype(jnp.float32)
    logits = x_flat @ w + b
    logz = jax.nn.logsumexp(logits, axis=-1)
    ce = jnp.mean(logz - logits[jnp.arange(B), y])
    out = ce + 0.5 * reg * (jnp.sum(w ** 2) + jnp.sum(b ** 2))
    acc = jnp.mean((jnp.argmax(logits, axis=-1) == y).astype(jnp.float32))
    return out, acc


if __name__ == "__main__":
    C, H, W = 4, 16, 16
    D = C * H * W
    reg = 1e-3

    # --- test 1: tiny batch, f32 compute path (bit-comparable to reference) ---
    B, K = 2, 8
    kx, ky, kw = jax.random.split(jax.random.PRNGKey(0), 3)
    x = jax.random.normal(kx, (B, C, H, W), dtype=jnp.float32)
    y = jax.random.randint(ky, (B,), 0, K, dtype=jnp.int32)
    w_param = 0.01 * jax.random.normal(kw, (D, K), dtype=jnp.float32)
    b_param = jnp.zeros((K,), dtype=jnp.float32)

    loss, acc = augce_forward(x, y, w_param, b_param, reg, with_acc=True)
    loss, acc = jax.block_until_ready((loss, acc))
    ref_loss, ref_acc = _augce_reference(x, y, w_param, b_param, reg)
    assert jnp.allclose(loss, ref_loss, rtol=1e-5, atol=1e-5), (loss, ref_loss)
    assert jnp.allclose(acc, ref_acc, rtol=1e-5, atol=1e-5), (acc, ref_acc)

    # --- test 2: multi-tile grid with ragged batch (B not multiple of TB) ---
    B2, K2 = 50, 10
    k1, k2, k3, k4 = jax.random.split(jax.random.PRNGKey(1), 4)
    x2 = jax.random.normal(k1, (B2, C, H, W), dtype=jnp.float32)
    y2 = jax.random.randint(k2, (B2,), 0, K2, dtype=jnp.int32)
    w2 = 0.01 * jax.random.normal(k3, (D, K2), dtype=jnp.float32)
    b2 = 0.01 * jax.random.normal(k4, (K2,), dtype=jnp.float32)

    loss2, acc2 = augce_forward(x2, y2, w2, b2, reg, with_acc=True, tile_b=16)
    loss2, acc2 = jax.block_until_ready((loss2, acc2))
    ref_loss2, ref_acc2 = _augce_reference(x2, y2, w2, b2, reg)
    assert jnp.allclose(loss2, ref_loss2, rtol=1e-5, atol=1e-5), (loss2, ref_loss2)
    assert jnp.allclose(acc2, ref_acc2, rtol=1e-5, atol=1e-5), (acc2, ref_acc2)

    # --- test 3: bf16 MXU path (v6e/v7x-friendly); reductions stay in f32 ---
    loss3 = augce_forward(x2, y2, w2, b2, reg, with_acc=False, tile_b=16,
                          compute_dtype=jnp.bfloat16)
    loss3 = jax.block_until_ready(loss3)
    assert jnp.allclose(loss3, ref_loss2, rtol=5e-2, atol=5e-2), (loss3, ref_loss2)

    print("KERNEL_OK")
</pallas_src>

<mosaic_0001>
module attributes {stable_mosaic.version = 11 : i64} {
  func.func @_augce_kernel(%arg0: i32, %arg1: memref<1x1xf32, #tpu.memory_space<smem>>, %arg2: memref<8x1024xf32, #tpu.memory_space<vmem>>, %arg3: memref<1024x128xf32, #tpu.memory_space<vmem>>, %arg4: memref<1x128xf32, #tpu.memory_space<vmem>>, %arg5: memref<8x1xi32, #tpu.memory_space<vmem>>, %arg6: memref<1x128xf32, #tpu.memory_space<vmem>>, %arg7: memref<1x128xf32, #tpu.memory_space<vmem>>, %arg8: memref<8x1xf32, #tpu.memory_space<vmem>>, %arg9: memref<8x1xf32, #tpu.memory_space<vmem>>) attributes {dimension_semantics = [#tpu.dimension_semantics<arbitrary>], iteration_bounds = array<i64: 1>, scalar_prefetch = 0 : i64, scratch_operands = 2 : i64, tpu.core_type = #tpu.core_type<tc>, window_params = [{transform_indices = @transform_0, window_bounds = array<i64: 1, 1>}, {transform_indices = @transform_1, window_bounds = array<i64: 8, 1024>}, {pipeline_mode = #tpu.pipeline_mode<synchronous>, transform_indices = @transform_2, window_bounds = array<i64: 1024, 128>}, {pipeline_mode = #tpu.pipeline_mode<synchronous>, transform_indices = @transform_3, window_bounds = array<i64: 1, 128>}, {transform_indices = @transform_4, window_bounds = array<i64: 8, 1>}, {pipeline_mode = #tpu.pipeline_mode<synchronous>, transform_indices = @transform_5, window_bounds = array<i64: 1, 128>}, {pipeline_mode = #tpu.pipeline_mode<synchronous>, transform_indices = @transform_6, window_bounds = array<i64: 1, 128>}]} {
    %c0_i32 = arith.constant 0 : i32
    %0 = arith.cmpi eq, %arg0, %c0_i32 : i32
    %1 = arith.extui %0 : i1 to i32
    %c0_i32_0 = arith.constant 0 : i32
    %2 = arith.cmpi ne, %1, %c0_i32_0 : i32
    scf.if %2 {
      %cst_27 = arith.constant 0.000000e+00 : f32
      %53 = vector.broadcast %cst_27 : f32 to vector<8x1xf32>
      %c0_28 = arith.constant 0 : index
      %c0_29 = arith.constant 0 : index
      %54 = vector.load %arg8[%c0_28, %c0_29] : memref<8x1xf32, #tpu.memory_space<vmem>>, vector<8x1xf32>
      tpu.vector_store %arg8[%c0_28, %c0_29], %53 {strides = array<i32>} : memref<8x1xf32, #tpu.memory_space<vmem>>, vector<8x1xf32>,
      %cst_30 = arith.constant 0.000000e+00 : f32
      %55 = vector.broadcast %cst_30 : f32 to vector<8x1xf32>
      %c0_31 = arith.constant 0 : index
      %c0_32 = arith.constant 0 : index
      %56 = vector.load %arg9[%c0_31, %c0_32] : memref<8x1xf32, #tpu.memory_space<vmem>>, vector<8x1xf32>
      tpu.vector_store %arg9[%c0_31, %c0_32], %55 {strides = array<i32>} : memref<8x1xf32, #tpu.memory_space<vmem>>, vector<8x1xf32>,
    } else {
    }
    %c0 = arith.constant 0 : index
    %c0_1 = arith.constant 0 : index
    %3 = vector.load %arg2[%c0, %c0_1] : memref<8x1024xf32, #tpu.memory_space<vmem>>, vector<8x1024xf32>
    %c0_2 = arith.constant 0 : index
    %c0_3 = arith.constant 0 : index
    %4 = vector.load %arg3[%c0_2, %c0_3] : memref<1024x128xf32, #tpu.memory_space<vmem>>, vector<1024x128xf32>
    %cst = arith.constant dense<0.000000e+00> : vector<8x128xf32>
    %5 = tpu.matmul %3, %4, %cst {dimension_numbers = #tpu.dot_dimension_numbers<[1], [0], [0], [1], [0, 0, 1, 1], [], []>} : vector<8x1024xf32>, vector<1024x128xf32>, vector<8x128xf32> -> vector<8x128xf32>
    %c0_4 = arith.constant 0 : index
    %c0_5 = arith.constant 0 : index
    %6 = vector.load %arg4[%c0_4, %c0_5] : memref<1x128xf32, #tpu.memory_space<vmem>>, vector<1x128xf32>
    %7 = vector.broadcast %6 : vector<1x128xf32> to vector<8x128xf32>
    %8 = arith.addf %5, %7 : vector<8x128xf32>
    %9 = tpu.iota {dimensions = array<i32: 1>} : vector<8x128xi32>
    %c8_i32 = arith.constant 8 : i32
    %10 = vector.broadcast %c8_i32 : i32 to vector<8x128xi32>
    %11 = arith.cmpi slt, %9, %10 : vector<8x128xi32>
    %cst_6 = arith.constant -1.000000e+30 : f32
    %12 = vector.broadcast %cst_6 : f32 to vector<8x128xf32>
    %13 = arith.select %11, %8, %12 : vector<8x128xi1>, vector<8x128xf32>
    %cst_7 = arith.constant dense<0xFF800000> : vector<8xf32>
    %14 = vector.multi_reduction <maximumf>, %13, %cst_7 [1] : vector<8x128xf32> to vector<8xf32>
    %15 = vector.shape_cast %14 : vector<8xf32> to vector<8x1xf32>
    %16 = vector.broadcast %15 : vector<8x1xf32> to vector<8x128xf32>
    %17 = arith.subf %13, %16 : vector<8x128xf32>
    %18 = math.exp %17 : vector<8x128xf32>
    %cst_8 = arith.constant dense<0.000000e+00> : vector<8xf32>
    %19 = vector.multi_reduction <add>, %18, %cst_8 [1] : vector<8x128xf32> to vector<8xf32>
    %20 = vector.shape_cast %19 : vector<8xf32> to vector<8x1xf32>
    %21 = math.log %20 : vector<8x1xf32>
    %22 = arith.addf %15, %21 : vector<8x1xf32>
    %c0_9 = arith.constant 0 : index
    %c0_10 = arith.constant 0 : index
    %23 = vector.load %arg5[%c0_9, %c0_10] : memref<8x1xi32, #tpu.memory_space<vmem>>, vector<8x1xi32>
    %24 = vector.broadcast %23 : vector<8x1xi32> to vector<8x128xi32>
    %25 = arith.cmpi eq, %9, %24 : vector<8x128xi32>
    %cst_11 = arith.constant 0.000000e+00 : f32
    %26 = vector.broadcast %cst_11 : f32 to vector<8x128xf32>
    %27 = arith.select %25, %13, %26 : vector<8x128xi1>, vector<8x128xf32>
    %cst_12 = arith.constant dense<0.000000e+00> : vector<8xf32>
    %28 = vector.multi_reduction <add>, %27, %cst_12 [1] : vector<8x128xf32> to vector<8xf32>
    %29 = vector.shape_cast %28 : vector<8xf32> to vector<8x1xf32>
    %c8_i32_13 = arith.constant 8 : i32
    %30 = arith.muli %arg0, %c8_i32_13 : i32
    %31 = tpu.iota {dimensions = array<i32: 0>} : vector<8x1xi32>
    %32 = vector.broadcast %30 : i32 to vector<8x1xi32>
    %33 = arith.addi %32, %31 : vector<8x1xi32>
    %c2_i32 = arith.constant 2 : i32
    %34 = vector.broadcast %c2_i32 : i32 to vector<8x1xi32>
    %35 = arith.cmpi slt, %33, %34 : vector<8x1xi32>
    %36 = arith.subf %22, %29 : vector<8x1xf32>
    %cst_14 = arith.constant 0.000000e+00 : f32
    %37 = vector.broadcast %cst_14 : f32 to vector<8x1xf32>
    %38 = arith.select %35, %36, %37 : vector<8x1xi1>, vector<8x1xf32>
    %39 = arith.cmpf oge, %29, %15 : vector<8x1xf32>
    %40 = arith.andi %35, %39 : vector<8x1xi1>
    %cst_15 = arith.constant 1.000000e+00 : f32
    %cst_16 = arith.constant 0.000000e+00 : f32
    %41 = vector.broadcast %cst_15 : f32 to vector<8x1xf32>
    %42 = vector.broadcast %cst_16 : f32 to vector<8x1xf32>
    %43 = arith.select %40, %41, %42 : vector<8x1xi1>, vector<8x1xf32>
    %c0_17 = arith.constant 0 : index
    %c0_18 = arith.constant 0 : index
    %44 = vector.load %arg8[%c0_17, %c0_18] : memref<8x1xf32, #tpu.memory_space<vmem>>, vector<8x1xf32>
    %45 = arith.addf %44, %38 : vector<8x1xf32>
    %c0_19 = arith.constant 0 : index
    %c0_20 = arith.constant 0 : index
    %46 = vector.load %arg8[%c0_19, %c0_20] : memref<8x1xf32, #tpu.memory_space<vmem>>, vector<8x1xf32>
    tpu.vector_store %arg8[%c0_19, %c0_20], %45 {strides = array<i32>} : memref<8x1xf32, #tpu.memory_space<vmem>>, vector<8x1xf32>,
    %c0_21 = arith.constant 0 : index
    %c0_22 = arith.constant 0 : index
    %47 = vector.load %arg9[%c0_21, %c0_22] : memref<8x1xf32, #tpu.memory_space<vmem>>, vector<8x1xf32>
    %48 = arith.addf %47, %43 : vector<8x1xf32>
    %c0_23 = arith.constant 0 : index
    %c0_24 = arith.constant 0 : index
    %49 = vector.load %arg9[%c0_23, %c0_24] : memref<8x1xf32, #tpu.memory_space<vmem>>, vector<8x1xf32>
    tpu.vector_store %arg9[%c0_23, %c0_24], %48 {strides = array<i32>} : memref<8x1xf32, #tpu.memory_space<vmem>>, vector<8x1xf32>,
    %c0_i32_25 = arith.constant 0 : i32
    %50 = arith.cmpi eq, %arg0, %c0_i32_25 : i32
    %51 = arith.extui %50 : i1 to i32
    %c0_i32_26 = arith.constant 0 : i32
    %52 = arith.cmpi ne, %51, %c0_i32_26 : i32
    scf.if %52 {
      %c0_27 = arith.constant 0 : index
      %c0_28 = arith.constant 0 : index
      %53 = memref.load %arg1[%c0_27, %c0_28] : memref<1x1xf32, #tpu.memory_space<smem>>
      %c0_29 = arith.constant 0 : index
      %c0_30 = arith.constant 0 : index
      %54 = vector.load %arg3[%c0_29, %c0_30] : memref<1024x128xf32, #tpu.memory_space<vmem>>, vector<1024x128xf32>
      %c0_31 = arith.constant 0 : index
      %c0_32 = arith.constant 0 : index
      %55 = vector.load %arg4[%c0_31, %c0_32] : memref<1x128xf32, #tpu.memory_space<vmem>>, vector<1x128xf32>
      %56 = arith.mulf %54, %54 : vector<1024x128xf32>
      %57 = vector.shape_cast %56 : vector<1024x128xf32> to vector<1x1024x128xf32>
      %cst_33 = arith.constant dense<0.000000e+00> : vector<1xf32>
      %58 = vector.multi_reduction <add>, %57, %cst_33 [1, 2] : vector<1x1024x128xf32> to vector<1xf32>
      %59 = vector.shape_cast %58 : vector<1xf32> to vector<1x1x1xf32>
      %60 = vector.extract %59[0, 0, 0] : f32 from vector<1x1x1xf32>
      %61 = arith.mulf %55, %55 : vector<1x128xf32>
      %62 = vector.shape_cast %61 : vector<1x128xf32> to vector<1x1x128xf32>
      %cst_34 = arith.constant dense<0.000000e+00> : vector<1xf32>
      %63 = vector.multi_reduction <add>, %62, %cst_34 [1, 2] : vector<1x1x128xf32> to vector<1xf32>
      %64 = vector.shape_cast %63 : vector<1xf32> to vector<1x1x1xf32>
      %65 = vector.extract %64[0, 0, 0] : f32 from vector<1x1x1xf32>
      %66 = arith.addf %60, %65 : f32
      %c0_35 = arith.constant 0 : index
      %c0_36 = arith.constant 0 : index
      %67 = vector.load %arg8[%c0_35, %c0_36] : memref<8x1xf32, #tpu.memory_space<vmem>>, vector<8x1xf32>
      %68 = vector.shape_cast %67 : vector<8x1xf32> to vector<1x8x1xf32>
      %cst_37 = arith.constant dense<0.000000e+00> : vector<1xf32>
      %69 = vector.multi_reduction <add>, %68, %cst_37 [1, 2] : vector<1x8x1xf32> to vector<1xf32>
      %70 = vector.shape_cast %69 : vector<1xf32> to vector<1x1x1xf32>
      %71 = vector.extract %70[0, 0, 0] : f32 from vector<1x1x1xf32>
      %cst_38 = arith.constant 5.000000e-01 : f32
      %72 = arith.mulf %71, %cst_38 : f32
      %cst_39 = arith.constant 5.000000e-01 : f32
      %73 = arith.mulf %cst_39, %53 : f32
      %74 = arith.mulf %73, %66 : f32
      %75 = arith.addf %72, %74 : f32
      %c0_40 = arith.constant 0 : index
      %c0_41 = arith.constant 0 : index
      %76 = vector.load %arg9[%c0_40, %c0_41] : memref<8x1xf32, #tpu.memory_space<vmem>>, vector<8x1xf32>
      %77 = vector.shape_cast %76 : vector<8x1xf32> to vector<1x8x1xf32>
      %cst_42 = arith.constant dense<0.000000e+00> : vector<1xf32>
      %78 = vector.multi_reduction <add>, %77, %cst_42 [1, 2] : vector<1x8x1xf32> to vector<1xf32>
      %79 = vector.shape_cast %78 : vector<1xf32> to vector<1x1x1xf32>
      %80 = vector.extract %79[0, 0, 0] : f32 from vector<1x1x1xf32>
      %cst_43 = arith.constant 5.000000e-01 : f32
      %81 = arith.mulf %80, %cst_43 : f32
      %82 = vector.broadcast %75 : f32 to vector<1x128xf32>
      %c0_44 = arith.constant 0 : index
      %c0_45 = arith.constant 0 : index
      %83 = vector.load %arg6[%c0_44, %c0_45] : memref<1x128xf32, #tpu.memory_space<vmem>>, vector<1x128xf32>
      tpu.vector_store %arg6[%c0_44, %c0_45], %82 {strides = array<i32>} : memref<1x128xf32, #tpu.memory_space<vmem>>, vector<1x128xf32>,
      %84 = vector.broadcast %81 : f32 to vector<1x128xf32>
      %c0_46 = arith.constant 0 : index
      %c0_47 = arith.constant 0 : index
      %85 = vector.load %arg7[%c0_46, %c0_47] : memref<1x128xf32, #tpu.memory_space<vmem>>, vector<1x128xf32>
      tpu.vector_store %arg7[%c0_46, %c0_47], %84 {strides = array<i32>} : memref<1x128xf32, #tpu.memory_space<vmem>>, vector<1x128xf32>,
    } else {
    }
    return
  }
  func.func @transform_0(%arg0: i32) -> (i32, i32) {
    %c0_i32 = arith.constant 0 : i32
    %c0_i32_0 = arith.constant 0 : i32
    %c0_i32_1 = arith.constant 0 : i32
    return %c0_i32, %c0_i32_0 : i32, i32
  }
  func.func @transform_1(%arg0: i32) -> (i32, i32) {
    %c0_i32 = arith.constant 0 : i32
    %c0_i32_0 = arith.constant 0 : i32
    return %arg0, %c0_i32 : i32, i32
  }
  func.func @transform_2(%arg0: i32) -> (i32, i32) {
    %c0_i32 = arith.constant 0 : i32
    %c0_i32_0 = arith.constant 0 : i32
    %c0_i32_1 = arith.constant 0 : i32
    return %c0_i32, %c0_i32_0 : i32, i32
  }
  func.func @transform_3(%arg0: i32) -> (i32, i32) {
    %c0_i32 = arith.constant 0 : i32
    %c0_i32_0 = arith.constant 0 : i32
    %c0_i32_1 = arith.constant 0 : i32
    return %c0_i32, %c0_i32_0 : i32, i32
  }
  func.func @transform_4(%arg0: i32) -> (i32, i32) {
    %c0_i32 = arith.constant 0 : i32
    %c0_i32_0 = arith.constant 0 : i32
    return %arg0, %c0_i32 : i32, i32
  }
  func.func @transform_5(%arg0: i32) -> (i32, i32) {
    %c0_i32 = arith.constant 0 : i32
    %c0_i32_0 = arith.constant 0 : i32
    %c0_i32_1 = arith.constant 0 : i32
    return %c0_i32, %c0_i32_0 : i32, i32
  }
  func.func @transform_6(%arg0: i32) -> (i32, i32) {
    %c0_i32 = arith.constant 0 : i32
    %c0_i32_0 = arith.constant 0 : i32
    %c0_i32_1 = arith.constant 0 : i32
    return %c0_i32, %c0_i32_0 : i32, i32
  }
}

</mosaic_0001>

<bundles_post_ra>
// kernel: tpu_custom_call.1
= control target key start
LH: loop header
LB: loop body
LE: loop exit
PB: predicated region body
PF: predicated region fallthrough
CT: control target
= control target key end

     0   :  { %13 = vsyncpa [#allocation6], 0  ;;  %s2158_s0 = inlined_call_operand.<no memory space> [shape: f32[1,1], index: 0, kind: input, shape index: {}]   ;;  %s2159_s1 = inlined_call_operand.hbm [shape: f32[8,1024], index: 1, kind: input, shape index: {}]   ;;  %s2160_s2 = inlined_call_operand.hbm [shape: f32[1024,128], index: 2, kind: input, shape index: {}]   ;;  %s2161_s3 = inlined_call_operand.vmem [shape: f32[1,128], index: 3, kind: input, shape index: {}]   ;;  %s2162_s4 = inlined_call_operand.vmem [shape: s32[8,1], index: 4, kind: input, shape index: {}]   ;;  %s2163_s5 = inlined_call_operand.hbm [shape: f32[1,128], index: 5, kind: output, shape index: {0}]   ;;  %s2164_s6 = inlined_call_operand.hbm [shape: f32[1,128], index: 6, kind: output, shape index: {1}]  }
   0x1   :  { %14 = vsyncpa [#allocation9], 0 }
   0x2   :  { %15 = vsyncpa [#allocation7], 0 }
   0x3   :  { %16 = vsyncpa [#allocation12], 0  ;;  %s1378_s21 = smov [#allocation5]   ;;  %s1379_s23 = smov [#allocation8]  }
   0x4   :  { %s25_s22 = sshll.u32 %s1378_s21, 4  ;;  %s34_s24 = sshll.u32 %s1379_s23, 4  ;;  %s26_s22 = int_to_ptr.vmem [resolvable:$true] %s25_s22  ;;  %s1421_s24 = int_to_ptr.vmem [resolvable:$true] %s34_s24 }
   0x5   :  { %s1282_s27 = scalar_lea.hbm %s2159_s1, 1024 }
   0x6   :  { %p1283_p0 = scmp.ne.s32.totalorder %s2159_s1, %s1282_s27  ;;  %p1286_p1 = scmp.lt.u32.totalorder %s1282_s27, %s2159_s1 }
   0x8   :  { %p1288_p2 = pnand %p1286_p1, %p1283_p0 }
   0xa   :  { %1291 = shalt.err (!%p1288_p2)
}
   0xb   :  { %s1292_s8 = scalar_lea.vmem %s26_s22, 1024  ;;  %p1297_p4 = scmp.lt.s32.totalorder %s26_s22, %s26_s22 }
   0xc   :  { %p1293_p3 = scmp.ne.s32.totalorder %s26_s22, %s1292_s8  ;;  %p1298_p5 = scmp.lt.s32.totalorder %s1292_s8, %s1292_s8 }
   0xe   :  { %p1299_p6 = por %p1298_p5, %p1297_p4 }
  0x10   :  { %p1300_p7 = pnand %p1299_p6, %p1293_p3 }
  0x12   :  { %1303 = shalt.err (!%p1300_p7)
}
  0x13   :  { %28 = dma.hbm_to_vmem [thread:$0]  %s2159_s1, 1024, %s26_s22, [#allocation6]  }
  0x14   :  { %s1304_s13 = scalar_lea.hbm %s2160_s2, 16384 }
  0x15   :  { %p1305_p8 = scmp.ne.s32.totalorder %s2160_s2, %s1304_s13  ;;  %p1308_p9 = scmp.lt.u32.totalorder %s1304_s13, %s2160_s2 }
  0x17   :  { %p1310_p10 = pnand %p1308_p9, %p1305_p8 }
  0x19   :  { %1313 = shalt.err (!%p1310_p10)
}
  0x1a   :  { %s1314_s18 = scalar_lea.vmem %s1421_s24, 16384  ;;  %p1319_p12 = scmp.lt.s32.totalorder %s1421_s24, %s1421_s24 }
  0x1b   :  { %p1315_p11 = scmp.ne.s32.totalorder %s1421_s24, %s1314_s18  ;;  %p1320_p13 = scmp.lt.s32.totalorder %s1314_s18, %s1314_s18 }
  0x1d   :  { %p1321_p0 = por %p1320_p13, %p1319_p12 }
  0x1f   :  { %p1322_p1 = pnand %p1321_p0, %p1315_p11 }
  0x21   :  { %1325 = shalt.err (!%p1322_p1)
}
  0x22   :  { %s1380_s1 = smov 128   ;;  %s1381_s19 = smov 8  }
  0x23   :  { %40 = dma.hbm_to_vmem [thread:$0]  %s2160_s2, 16384, %s1421_s24, [#allocation9], %s1380_s1, %s1380_s1, %s1381_s19  }
  0x24   :  { %1370 = dma.done.wait [#allocation6], 1024  }
  0x25   :  { %1371 = vsyncadd [#allocation6], 4294966272 }
  0x26   :  { %1372 = dma.done.wait [#allocation9], 16384  }
  0x27   :  { %1373 = vsyncadd [#allocation9], 4294950912  ;;  %v1452_v0 = vld [vmem:[#allocation8 + $0x80] sm:$0xff]  ;;  %v1454_v1 = vld [vmem:[#allocation8 + $0x88] sm:$0xff]  ;;  %vm55_vm2 = vcmask 7168   ;;  %vm919_vm3 = vcmask 1040384  }
  0x28   :  { %v1456_v2 = vld [vmem:[#allocation8] sm:$0xff]  ;;  %v1133_v3 = vpack.c.bf16 %v1454_v1, %v1452_v0  ;;  %v1460_v4 = vld [vmem:[#allocation8 + $0x8] sm:$0xff]  ;;  %v1474_v11 = vld [vmem:[#allocation8 + $0x90] sm:$0xff]  ;;  %s943_s30 = smul.f32 0.5, %s2158_s0  ;;  %s1384_s10 = smov [#allocation10]  }
  0x29   :  { %v1462_v5 = vld [vmem:[#allocation8 + $0x180] sm:$0xff]  ;;  %v1464_v6 = vld [vmem:[#allocation8 + $0x188] sm:$0xff]  ;;  %v1135_v7 = vpack.c.bf16 %v1460_v4, %v1456_v2  ;;  %v1478_v13 = vld [vmem:[#allocation8 + $0x98] sm:$0xff]  ;;  %s968_s11 = sshll.u32 %s1384_s10, 4  ;;  %s1385_s13 = smov [#allocation11]   ;;  %s969_s11 = int_to_ptr.vmem [resolvable:$true] %s968_s11 }
  0x2a   :  { %2239 = vst [vmem:[#allocation17_spill] sm:$0xff] %v1462_v5  ;;  %2240 = vst [vmem:[#allocation18_spill] sm:$0xff] %v1464_v6  ;;  %v1165_v8 = vpack.c.bf16 %v1464_v6, %v1462_v5  ;;  %v1470_v9 = vld [vmem:[#allocation8 + $0x100] sm:$0xff]  ;;  %v1472_v10 = vld [vmem:[#allocation8 + $0x108] sm:$0xff]  ;;  %1134 = vmatprep.subr.bf16.mxu0 %v1133_v3  ;;  %v1137_v16 = vpack.c.bf16 %v1478_v13, %v1474_v11  ;;  %s978_s14 = sshll.u32 %s1385_s13, 4  ;;  %s1326_s17 = scalar_lea.vmem %s969_s11, 16  ;;  %s2126_s14 = int_to_ptr.vmem [resolvable:$true] %s978_s14 }
  0x2b   :  { %v1167_v12 = vpack.c.bf16 %v1472_v10, %v1470_v9  ;;  %v1480_v14 = vld [vmem:[#allocation8 + $0x10] sm:$0xff]  ;;  %v1482_v15 = vld [vmem:[#allocation8 + $0x18] sm:$0xff]  ;;  %1136 = vmatpush3.bf16.msra.mxu0 %v1135_v7  ;;  %v1498_v23 = vld [vmem:[#allocation8 + $0xa0] sm:$0xff]  ;;  %p1327_p2 = scmp.ne.s32.totalorder %s969_s11, %s1326_s17  ;;  %s1330_s18 = scalar_lea.vmem %s969_s11, 32 }
  0x2c   :  { %1166 = vmatprep.subr.bf16.mxu1 %v1165_v8  ;;  %v1139_v17 = vpack.c.bf16 %v1482_v15, %v1480_v14  ;;  %v1488_v18 = vld [vmem:[#allocation8 + $0x190] sm:$0xff]  ;;  %v1490_v19 = vld [vmem:[#allocation8 + $0x198] sm:$0xff]  ;;  %v1500_v24 = vld [vmem:[#allocation8 + $0xa8] sm:$0xff]  ;;  %1138 = vmatprep.subr.bf16.mxu0 %v1137_v16  ;;  %p1331_p3 = scmp.lt.s32.totalorder %s969_s11, %s969_s11  ;;  %p1332_p4 = scmp.lt.s32.totalorder %s1330_s18, %s1326_s17 }
  0x2d   :  { %2241 = vst [vmem:[#allocation19_spill] sm:$0xff] %v1488_v18  ;;  %2242 = vst [vmem:[#allocation20_spill] sm:$0xff] %v1490_v19  ;;  %v1492_v20 = vld [vmem:[#allocation8 + $0x110] sm:$0xff]  ;;  %1168 = vmatpush3.bf16.msra.mxu1 %v1167_v12  ;;  %v1169_v21 = vpack.c.bf16 %v1490_v19, %v1488_v18  ;;  %v1496_v22 = vld [vmem:[#allocation8 + $0x118] sm:$0xff]  ;;  %v1141_v26 = vpack.c.bf16 %v1500_v24, %v1498_v23 }
  0x2e   :  { %v1171_v25 = vpack.c.bf16 %v1496_v22, %v1492_v20  ;;  %v1506_v27 = vld [vmem:[#allocation8 + $0x20] sm:$0xff]  ;;  %v1508_v28 = vld [vmem:[#allocation8 + $0x28] sm:$0xff]  ;;  %v1522_v35 = vld [vmem:[#allocation8 + $0xb0] sm:$0xff]  ;;  %p1333_p5 = por %p1332_p4, %p1331_p3 }
  0x2f   :  { %v1510_v29 = vld [vmem:[#allocation8 + $0x1a0] sm:$0xff]  ;;  %1170 = vmatprep.subr.bf16.mxu1 %v1169_v21  ;;  %v1512_v30 = vld [vmem:[#allocation8 + $0x1a8] sm:$0xff]  ;;  %1140 = vmatpush3.bf16.msra.mxu0 %v1139_v17  ;;  %v1143_v33 = vpack.c.bf16 %v1508_v28, %v1506_v27  ;;  %v1524_v36 = vld [vmem:[#allocation8 + $0xb8] sm:$0xff] }
  0x30   :  { %2243 = vst [vmem:[#allocation21_spill] sm:$0xff] %v1510_v29  ;;  %2244 = vst [vmem:[#allocation22_spill] sm:$0xff] %v1512_v30  ;;  %v1514_v31 = vld [vmem:[#allocation8 + $0x120] sm:$0xff]  ;;  %v1516_v32 = vld [vmem:[#allocation8 + $0x128] sm:$0xff]  ;;  %v1173_v34 = vpack.c.bf16 %v1512_v30, %v1510_v29  ;;  %1142 = vmatprep.subr.bf16.mxu0 %v1141_v26  ;;  %v1145_v39 = vpack.c.bf16 %v1524_v36, %v1522_v35  ;;  %p1334_p6 = pnand %p1333_p5, %p1327_p2 }
  0x31   :  { %v1526_v37 = vld [vmem:[#allocation8 + $0x30] sm:$0xff]  ;;  %1172 = vmatpush3.bf16.msra.mxu1 %v1171_v25  ;;  %v1175_v38 = vpack.c.bf16 %v1516_v32, %v1514_v31  ;;  %v1532_v40 = vld [vmem:[#allocation8 + $0x38] sm:$0xff]  ;;  %v1544_v46 = vld [vmem:[#allocation8 + $0xc0] sm:$0xff] }
  0x32   :  { %v1534_v41 = vld [vmem:[#allocation8 + $0x1b0] sm:$0xff]  ;;  %v1536_v42 = vld [vmem:[#allocation8 + $0x1b8] sm:$0xff]  ;;  %1174 = vmatprep.subr.bf16.mxu1 %v1173_v34  ;;  %v1546_v47 = vld [vmem:[#allocation8 + $0xc8] sm:$0xff]  ;;  %v1147_v48 = vpack.c.bf16 %v1532_v40, %v1526_v37 }
  0x33   :  { %2245 = vst [vmem:[#allocation23_spill] sm:$0xff] %v1534_v41  ;;  %2246 = vst [vmem:[#allocation24_spill] sm:$0xff] %v1536_v42  ;;  %v1177_v43 = vpack.c.bf16 %v1536_v42, %v1534_v41  ;;  %v1540_v44 = vld [vmem:[#allocation8 + $0x130] sm:$0xff]  ;;  %v1542_v45 = vld [vmem:[#allocation8 + $0x138] sm:$0xff]  ;;  %1144 = vmatpush3.bf16.msra.mxu0 %v1143_v33  ;;  %v1149_v52 = vpack.c.bf16 %v1546_v47, %v1544_v46 }
  0x34   :  { %v1550_v49 = vld [vmem:[#allocation8 + $0x1c0] sm:$0xff]  ;;  %v1552_v50 = vld [vmem:[#allocation8 + $0x1c8] sm:$0xff]  ;;  %1146 = vmatprep.subr.bf16.mxu0 %v1145_v39  ;;  %v1179_v51 = vpack.c.bf16 %v1542_v45, %v1540_v44  ;;  %v1568_v58 = vld [vmem:[#allocation8 + $0xd0] sm:$0xff] }
  0x35   :  { %2247 = vst [vmem:[#allocation25_spill] sm:$0xff] %v1550_v49  ;;  %2248 = vst [vmem:[#allocation26_spill] sm:$0xff] %v1552_v50  ;;  %1176 = vmatpush3.bf16.msra.mxu1 %v1175_v38  ;;  %v1558_v53 = vld [vmem:[#allocation8 + $0x40] sm:$0xff]  ;;  %v1560_v54 = vld [vmem:[#allocation8 + $0x48] sm:$0xff]  ;;  %v1181_v56 = vpack.c.bf16 %v1552_v50, %v1550_v49 }
  0x36   :  { %v1562_v55 = vld [vmem:[#allocation8 + $0x140] sm:$0xff]  ;;  %1178 = vmatprep.subr.bf16.mxu1 %v1177_v43  ;;  %v1566_v57 = vld [vmem:[#allocation8 + $0x148] sm:$0xff]  ;;  %v1570_v59 = vld [vmem:[#allocation8 + $0xd8] sm:$0xff]  ;;  %v1151_v62 = vpack.c.bf16 %v1560_v54, %v1558_v53 }
  0x37   :  { %v1572_v60 = vld [vmem:[#allocation8 + $0x1d0] sm:$0xff]  ;;  %v1574_v61 = vld [vmem:[#allocation8 + $0x1d8] sm:$0xff]  ;;  %1148 = vmatpush3.bf16.msra.mxu0 %v1147_v48  ;;  %v1183_v63 = vpack.c.bf16 %v1566_v57, %v1562_v55  ;;  %v1153_v3 = vpack.c.bf16 %v1570_v59, %v1568_v58  ;;  %v1592_v21 = vld [vmem:[#allocation8 + $0xe0] sm:$0xff] }
  0x38   :  { %2249 = vst [vmem:[#allocation27_spill] sm:$0xff] %v1572_v60  ;;  %2250 = vst [vmem:[#allocation28_spill] sm:$0xff] %v1574_v61  ;;  %1150 = vmatprep.subr.bf16.mxu0 %v1149_v52  ;;  %v1582_v7 = vld [vmem:[#allocation8 + $0x50] sm:$0xff]  ;;  %v1584_v8 = vld [vmem:[#allocation8 + $0x58] sm:$0xff]  ;;  %v1185_v16 = vpack.c.bf16 %v1574_v61, %v1572_v60 }
  0x39   :  { %1180 = vmatpush3.bf16.msra.mxu1 %v1179_v51  ;;  %v1586_v12 = vld [vmem:[#allocation8 + $0x150] sm:$0xff]  ;;  %v1590_v17 = vld [vmem:[#allocation8 + $0x158] sm:$0xff]  ;;  %v1594_v25 = vld [vmem:[#allocation8 + $0xe8] sm:$0xff]  ;;  %v1155_v34 = vpack.c.bf16 %v1584_v8, %v1582_v7 }
  0x3a   :  { %1182 = vmatprep.subr.bf16.mxu1 %v1181_v56  ;;  %v1596_v26 = vld [vmem:[#allocation8 + $0x1e0] sm:$0xff]  ;;  %v1598_v33 = vld [vmem:[#allocation8 + $0x1e8] sm:$0xff]  ;;  %v1187_v43 = vpack.c.bf16 %v1590_v17, %v1586_v12  ;;  %v1157_v48 = vpack.c.bf16 %v1594_v25, %v1592_v21  ;;  %v1616_v61 = vld [vmem:[#allocation8 + $0xf0] sm:$0xff] }
  0x3b   :  { %2251 = vst [vmem:[#allocation29_spill] sm:$0xff] %v1596_v26  ;;  %2252 = vst [vmem:[#allocation30_spill] sm:$0xff] %v1598_v33  ;;  %1152 = vmatpush3.bf16.msra.mxu0 %v1151_v62  ;;  %v1602_v38 = vld [vmem:[#allocation8 + $0x60] sm:$0xff]  ;;  %v1604_v39 = vld [vmem:[#allocation8 + $0x68] sm:$0xff]  ;;  %v1189_v62 = vpack.c.bf16 %v1598_v33, %v1596_v26 }
  0x3c   :  { %1154 = vmatprep.subr.bf16.mxu0 %v1153_v3  ;;  %v1610_v51 = vld [vmem:[#allocation8 + $0x160] sm:$0xff]  ;;  %v1612_v52 = vld [vmem:[#allocation8 + $0x168] sm:$0xff]  ;;  %v1618_v60 = vld [vmem:[#allocation8 + $0xf8] sm:$0xff]  ;;  %v1159_v49 = vpack.c.bf16 %v1604_v39, %v1602_v38 }
  0x3d   :  { %1184 = vmatpush3.bf16.msra.mxu1 %v1183_v63  ;;  %2253 = vst [vmem:[#allocation31_spill] sm:$0xff] %v1610_v51  ;;  %2254 = vst [vmem:[#allocation32_spill] sm:$0xff] %v1612_v52  ;;  %v59_v56 = vld [vmem:[#allocation5 + $0x8] sm:$0xff]  ;;  %v61_v63 = vld [vmem:[#allocation5 + $0x18] sm:$0xff]  ;;  %v1161_v33 = vpack.c.bf16 %v1618_v60, %v1616_v61 }
  0x3e   :  { %1186 = vmatprep.subr.bf16.mxu1 %v1185_v16  ;;  %265 = vmatprep.mubr.f32.mxu0 %v59_v56  ;;  %v1620_v3 = vld [vmem:[#allocation8 + $0x1f0] sm:$0xff]  ;;  %v1622_v50 = vld [vmem:[#allocation8 + $0x1f8] sm:$0xff]  ;;  %v1191_v16 = vpack.c.bf16 %v1612_v52, %v1610_v51  ;;  %v1644_v41 = vld [vmem:[#allocation8 + $0x380] sm:$0xff] }
  0x3f   :  { %2255 = vst [vmem:[#allocation33_spill] sm:$0xff] %v1620_v3  ;;  %2256 = vst [vmem:[#allocation34_spill] sm:$0xff] %v1622_v50  ;;  %335 = vmatprep.mubr.f32.mxu1 %v61_v63  ;;  %1156 = vmatpush3.bf16.msra.mxu0 %v1155_v34  ;;  %v1630_v26 = vld [vmem:[#allocation8 + $0x70] sm:$0xff]  ;;  %v1632_v56 = vld [vmem:[#allocation8 + $0x78] sm:$0xff]  ;;  %v1193_v34 = vpack.c.bf16 %v1622_v50, %v1620_v3 }
  0x40   :  { %1158 = vmatprep.subr.bf16.mxu0 %v1157_v48  ;;  %v1634_v42 = vld [vmem:[#allocation8 + $0x170] sm:$0xff]  ;;  %v1638_v63 = vld [vmem:[#allocation8 + $0x178] sm:$0xff]  ;;  %v1642_v48 = vld [vmem:[#allocation8 + $0x288] sm:$0xff]  ;;  %2261 = vst [vmem:[#allocation39_spill] sm:$0xff] %v1644_v41  ;;  %v1163_v29 = vpack.c.bf16 %v1632_v56, %v1630_v26 }
  0x41   :  { %1188 = vmatpush3.bf16.msra.mxu1 %v1187_v43  ;;  %2257 = vst [vmem:[#allocation35_spill] sm:$0xff] %v1634_v42  ;;  %2258 = vst [vmem:[#allocation36_spill] sm:$0xff] %v1638_v63  ;;  %v1640_v43 = vld [vmem:[#allocation8 + $0x280] sm:$0xff]  ;;  %v1646_v30 = vld [vmem:[#allocation8 + $0x388] sm:$0xff] }
  0x42   :  { %1190 = vmatprep.subr.bf16.mxu1 %v1189_v62  ;;  %2259 = vst [vmem:[#allocation37_spill] sm:$0xff] %v1640_v43  ;;  %2260 = vst [vmem:[#allocation38_spill] sm:$0xff] %v1642_v48  ;;  %v1195_v62 = vpack.c.bf16 %v1638_v63, %v1634_v42  ;;  %v1197_v50 = vpack.c.bf16 %v1642_v48, %v1640_v43  ;;  %v1654_v3 = vld [vmem:[#allocation8 + $0x200] sm:$0xff]  ;;  %v1656_v19 = vld [vmem:[#allocation8 + $0x208] sm:$0xff] }
  0x43   :  { %2262 = vst [vmem:[#allocation40_spill] sm:$0xff] %v1646_v30  ;;  %1160 = vmatpush3.bf16.msra.mxu0 %v1159_v49  ;;  %2263 = vst [vmem:[#allocation41_spill] sm:$0xff] %v1654_v3  ;;  %v1658_v18 = vld [vmem:[#allocation8 + $0x300] sm:$0xff]  ;;  %v1229_v49 = vpack.c.bf16 %v1646_v30, %v1644_v41  ;;  %v1662_v6 = vld [vmem:[#allocation8 + $0x308] sm:$0xff]  ;;  %v1199_v43 = vpack.c.bf16 %v1656_v19, %v1654_v3 }
  0x44   :  { %1162 = vmatprep.subr.bf16.mxu0 %v1161_v33  ;;  %2264 = vst [vmem:[#allocation42_spill] sm:$0xff] %v1656_v19  ;;  %2265 = vst [vmem:[#allocation43_spill] sm:$0xff] %v1658_v18  ;;  %v1666_v33 = vld [vmem:[#allocation8 + $0x298] sm:$0xff]  ;;  %v1668_v5 = vld [vmem:[#allocation8 + $0x390] sm:$0xff] }
  0x45   :  { %1192 = vmatpush3.bf16.msra.mxu1 %v1191_v16  ;;  %2266 = vst [vmem:[#allocation44_spill] sm:$0xff] %v1662_v6  ;;  %v1664_v16 = vld [vmem:[#allocation8 + $0x290] sm:$0xff]  ;;  %2268 = vst [vmem:[#allocation46_spill] sm:$0xff] %v1666_v33  ;;  %v1670_v63 = vld [vmem:[#allocation8 + $0x398] sm:$0xff] }
  0x46   :  { %1194 = vmatprep.subr.bf16.mxu1 %v1193_v34  ;;  %2267 = vst [vmem:[#allocation45_spill] sm:$0xff] %v1664_v16  ;;  %2269 = vst [vmem:[#allocation47_spill] sm:$0xff] %v1668_v5  ;;  %v58_v48 = vld [vmem:[#allocation5] sm:$0xff]  ;;  %v60_v42 = vld [vmem:[#allocation5 + $0x10] sm:$0xff]  ;;  %v1231_v34 = vpack.c.bf16 %v1662_v6, %v1658_v18  ;;  %v1201_v30 = vpack.c.bf16 %v1666_v33, %v1664_v16 }
  0x47   :  { %2270 = vst [vmem:[#allocation48_spill] sm:$0xff] %v1670_v63  ;;  %1164 = vmatpush3.bf16.msra.mxu0 %v1163_v29  ;;  %v1678_v41 = vld [vmem:[#allocation8 + $0x210] sm:$0xff]  ;;  %v1680_v52 = vld [vmem:[#allocation8 + $0x218] sm:$0xff]  ;;  %v1233_v29 = vpack.c.bf16 %v1670_v63, %v1668_v5  ;;  %v1692_v6 = vld [vmem:[#allocation8 + $0x3a0] sm:$0xff] }
  0x48   :  { %1198 = vmatprep.subr.bf16.mxu0 %v1197_v50  ;;  %2271 = vst [vmem:[#allocation49_spill] sm:$0xff] %v1678_v41  ;;  %2272 = vst [vmem:[#allocation50_spill] sm:$0xff] %v1680_v52  ;;  %v1682_v51 = vld [vmem:[#allocation8 + $0x310] sm:$0xff]  ;;  %v1686_v19 = vld [vmem:[#allocation8 + $0x318] sm:$0xff]  ;;  %v1203_v33 = vpack.c.bf16 %v1680_v52, %v1678_v41 }
  0x49   :  { %1196 = vmatpush3.bf16.msra.mxu1 %v1195_v62  ;;  %2273 = vst [vmem:[#allocation51_spill] sm:$0xff] %v1682_v51  ;;  %2274 = vst [vmem:[#allocation52_spill] sm:$0xff] %v1686_v19  ;;  %v1688_v62 = vld [vmem:[#allocation8 + $0x2a0] sm:$0xff]  ;;  %v1690_v50 = vld [vmem:[#allocation8 + $0x2a8] sm:$0xff] }
  0x4a   :  { %1230 = vmatprep.subr.bf16.mxu1 %v1229_v49  ;;  %2275 = vst [vmem:[#allocation53_spill] sm:$0xff] %v1688_v62  ;;  %2276 = vst [vmem:[#allocation54_spill] sm:$0xff] %v1690_v50  ;;  %266 = vmatmul.mubr.f32.vlgmr.msra.gmra.mrb[0].mxu0 %v58_v48  ;;  %v1694_v18 = vld [vmem:[#allocation8 + $0x3a8] sm:$0xff]  ;;  %v1235_v49 = vpack.c.bf16 %v1686_v19, %v1682_v51  ;;  %v1205_v63 = vpack.c.bf16 %v1690_v50, %v1688_v62  ;;  %v1702_v5 = vld [vmem:[#allocation8 + $0x220] sm:$0xff] }
  0x4b   :  { %2277 = vst [vmem:[#allocation55_spill] sm:$0xff] %v1692_v6  ;;  %2278 = vst [vmem:[#allocation56_spill] sm:$0xff] %v1694_v18  ;;  %1200 = vmatpush3.bf16.msra.mxu0 %v1199_v43  ;;  %v1704_v48 = vld [vmem:[#allocation8 + $0x228] sm:$0xff]  ;;  %v1706_v16 = vld [vmem:[#allocation8 + $0x320] sm:$0xff] }
  0x4c   :  { %336 = vmatmul.mubr.f32.vlgmr.msra.gmra.mrb[0].mxu1 %v60_v42  ;;  %1202 = vmatprep.subr.bf16.mxu0 %v1201_v30  ;;  %2279 = vst [vmem:[#allocation57_spill] sm:$0xff] %v1702_v5  ;;  %2280 = vst [vmem:[#allocation58_spill] sm:$0xff] %v1704_v48  ;;  %v1237_v42 = vpack.c.bf16 %v1694_v18, %v1692_v6  ;;  %v1710_v43 = vld [vmem:[#allocation8 + $0x328] sm:$0xff]  ;;  %v1714_v30 = vld [vmem:[#allocation8 + $0x2b8] sm:$0xff]  ;;  %v1207_v50 = vpack.c.bf16 %v1704_v48, %v1702_v5 }
  0x4d   :  { %1232 = vmatpush3.bf16.msra.mxu1 %v1231_v34  ;;  %2281 = vst [vmem:[#allocation59_spill] sm:$0xff] %v1706_v16  ;;  %2282 = vst [vmem:[#allocation60_spill] sm:$0xff] %v1710_v43  ;;  %v1712_v34 = vld [vmem:[#allocation8 + $0x2b0] sm:$0xff]  ;;  %v1718_v51 = vld [vmem:[#allocation8 + $0x3b8] sm:$0xff] }
  0x4e   :  { %1234 = vmatprep.subr.bf16.mxu1 %v1233_v29  ;;  %2283 = vst [vmem:[#allocation61_spill] sm:$0xff] %v1712_v34  ;;  %2284 = vst [vmem:[#allocation62_spill] sm:$0xff] %v1714_v30  ;;  %v1716_v19 = vld [vmem:[#allocation8 + $0x3b0] sm:$0xff]  ;;  %v1239_v29 = vpack.c.bf16 %v1710_v43, %v1706_v16  ;;  %v1209_v18 = vpack.c.bf16 %v1714_v30, %v1712_v34  ;;  %v1728_v62 = vld [vmem:[#allocation8 + $0x238] sm:$0xff] }
  0x4f   :  { %2285 = vst [vmem:[#allocation63_spill] sm:$0xff] %v1716_v19  ;;  %2286 = vst [vmem:[#allocation64_spill] sm:$0xff] %v1718_v51  ;;  %1204 = vmatpush3.bf16.msra.mxu0 %v1203_v33  ;;  %v1726_v6 = vld [vmem:[#allocation8 + $0x230] sm:$0xff]  ;;  %v1241_v33 = vpack.c.bf16 %v1718_v51, %v1716_v19  ;;  %v1734_v41 = vld [vmem:[#allocation8 + $0x338] sm:$0xff] }
  0x50   :  { %1206 = vmatprep.subr.bf16.mxu0 %v1205_v63  ;;  %2287 = vst [vmem:[#allocation65_spill] sm:$0xff] %v1728_v62  ;;  %v1730_v52 = vld [vmem:[#allocation8 + $0x330] sm:$0xff]  ;;  %2289 = vst [vmem:[#allocation67_spill] sm:$0xff] %v1734_v41  ;;  %v1738_v63 = vld [vmem:[#allocation8 + $0x2c8] sm:$0xff]  ;;  %v1211_v30 = vpack.c.bf16 %v1728_v62, %v1726_v6 }
  0x51   :  { %1236 = vmatpush3.bf16.msra.mxu1 %v1235_v49  ;;  %2288 = vst [vmem:[#allocation66_spill] sm:$0xff] %v1730_v52  ;;  %v1736_v49 = vld [vmem:[#allocation8 + $0x2c0] sm:$0xff]  ;;  %2291 = vst [vmem:[#allocation69_spill] sm:$0xff] %v1738_v63  ;;  %v1742_v16 = vld [vmem:[#allocation8 + $0x3c8] sm:$0xff] }
  0x52   :  { %1238 = vmatprep.subr.bf16.mxu1 %v1237_v42  ;;  %2290 = vst [vmem:[#allocation68_spill] sm:$0xff] %v1736_v49  ;;  %v1740_v43 = vld [vmem:[#allocation8 + $0x3c0] sm:$0xff]  ;;  %2293 = vst [vmem:[#allocation71_spill] sm:$0xff] %v1742_v16  ;;  %v63_v34 = vld [vmem:[#allocation5 + $0x28] sm:$0xff]  ;;  %v1243_v42 = vpack.c.bf16 %v1734_v41, %v1730_v52  ;;  %v1213_v51 = vpack.c.bf16 %v1738_v63, %v1736_v49 }
  0x53   :  { %2292 = vst [vmem:[#allocation70_spill] sm:$0xff] %v1740_v43  ;;  %1208 = vmatpush3.bf16.msra.mxu0 %v1207_v50  ;;  %v65_v48 = vld [vmem:[#allocation5 + $0x38] sm:$0xff]  ;;  %v1750_v19 = vld [vmem:[#allocation8 + $0x240] sm:$0xff]  ;;  %v1752_v5 = vld [vmem:[#allocation8 + $0x248] sm:$0xff]  ;;  %v1245_v50 = vpack.c.bf16 %v1742_v16, %v1740_v43  ;;  %405 = vmatprep.mubr.f32.mxu0 %v63_v34 }
  0x54   :  { %1210 = vmatprep.subr.bf16.mxu0 %v1209_v18  ;;  %2294 = vst [vmem:[#allocation72_spill] sm:$0xff] %v1750_v19  ;;  %2295 = vst [vmem:[#allocation73_spill] sm:$0xff] %v1752_v5  ;;  %v1754_v3 = vld [vmem:[#allocation8 + $0x340] sm:$0xff]  ;;  %v1758_v62 = vld [vmem:[#allocation8 + $0x348] sm:$0xff]  ;;  %475 = vmatprep.mubr.f32.mxu1 %v65_v48  ;;  %v1215_v63 = vpack.c.bf16 %v1752_v5, %v1750_v19 }
  0x55   :  { %1240 = vmatpush3.bf16.msra.mxu1 %v1239_v29  ;;  %2296 = vst [vmem:[#allocation74_spill] sm:$0xff] %v1754_v3  ;;  %2297 = vst [vmem:[#allocation75_spill] sm:$0xff] %v1758_v62  ;;  %v1760_v29 = vld [vmem:[#allocation8 + $0x2d0] sm:$0xff]  ;;  %v1762_v18 = vld [vmem:[#allocation8 + $0x2d8] sm:$0xff] }
  0x56   :  { %1242 = vmatprep.subr.bf16.mxu1 %v1241_v33  ;;  %2298 = vst [vmem:[#allocation76_spill] sm:$0xff] %v1760_v29  ;;  %2299 = vst [vmem:[#allocation77_spill] sm:$0xff] %v1762_v18  ;;  %v1764_v41 = vld [vmem:[#allocation8 + $0x3d0] sm:$0xff]  ;;  %v1766_v52 = vld [vmem:[#allocation8 + $0x3d8] sm:$0xff]  ;;  %v1247_v33 = vpack.c.bf16 %v1758_v62, %v1754_v3  ;;  %v1217_v16 = vpack.c.bf16 %v1762_v18, %v1760_v29 }
  0x57   :  { %2300 = vst [vmem:[#allocation78_spill] sm:$0xff] %v1764_v41  ;;  %2301 = vst [vmem:[#allocation79_spill] sm:$0xff] %v1766_v52  ;;  %1212 = vmatpush3.bf16.msra.mxu0 %v1211_v30  ;;  %v1774_v43 = vld [vmem:[#allocation8 + $0x250] sm:$0xff]  ;;  %v1776_v34 = vld [vmem:[#allocation8 + $0x258] sm:$0xff]  ;;  %v1249_v48 = vpack.c.bf16 %v1766_v52, %v1764_v41 }
  0x58   :  { %1214 = vmatprep.subr.bf16.mxu0 %v1213_v51  ;;  %2302 = vst [vmem:[#allocation80_spill] sm:$0xff] %v1774_v43  ;;  %2303 = vst [vmem:[#allocation81_spill] sm:$0xff] %v1776_v34  ;;  %v1778_v49 = vld [vmem:[#allocation8 + $0x350] sm:$0xff]  ;;  %v1782_v30 = vld [vmem:[#allocation8 + $0x358] sm:$0xff]  ;;  %v1219_v18 = vpack.c.bf16 %v1776_v34, %v1774_v43 }
  0x59   :  { %1244 = vmatpush3.bf16.msra.mxu1 %v1243_v42  ;;  %2304 = vst [vmem:[#allocation82_spill] sm:$0xff] %v1778_v49  ;;  %2305 = vst [vmem:[#allocation83_spill] sm:$0xff] %v1782_v30  ;;  %v1784_v42 = vld [vmem:[#allocation8 + $0x2e0] sm:$0xff]  ;;  %v1786_v51 = vld [vmem:[#allocation8 + $0x2e8] sm:$0xff] }
  0x5a   :  { %1246 = vmatprep.subr.bf16.mxu1 %v1245_v50  ;;  %2306 = vst [vmem:[#allocation84_spill] sm:$0xff] %v1784_v42  ;;  %2307 = vst [vmem:[#allocation85_spill] sm:$0xff] %v1786_v51  ;;  %v1788_v62 = vld [vmem:[#allocation8 + $0x3e0] sm:$0xff]  ;;  %v1790_v3 = vld [vmem:[#allocation8 + $0x3e8] sm:$0xff]  ;;  %v1251_v50 = vpack.c.bf16 %v1782_v30, %v1778_v49  ;;  %v1221_v52 = vpack.c.bf16 %v1786_v51, %v1784_v42 }
  0x5b   :  { %2308 = vst [vmem:[#allocation86_spill] sm:$0xff] %v1788_v62  ;;  %2309 = vst [vmem:[#allocation87_spill] sm:$0xff] %v1790_v3  ;;  %1216 = vmatpush3.bf16.msra.mxu0 %v1215_v63  ;;  %v1798_v41 = vld [vmem:[#allocation8 + $0x260] sm:$0xff]  ;;  %v1800_v29 = vld [vmem:[#allocation8 + $0x268] sm:$0xff]  ;;  %v1253_v63 = vpack.c.bf16 %v1790_v3, %v1788_v62 }
  0x5c   :  { %1218 = vmatprep.subr.bf16.mxu0 %v1217_v16  ;;  %v1802_v5 = vld [vmem:[#allocation8 + $0x360] sm:$0xff]  ;;  %v1806_v19 = vld [vmem:[#allocation8 + $0x368] sm:$0xff]  ;;  %v1810_v16 = vld [vmem:[#allocation8 + $0x2f8] sm:$0xff]  ;;  %v1223_v51 = vpack.c.bf16 %v1800_v29, %v1798_v41 }
  0x5d   :  { %1248 = vmatpush3.bf16.msra.mxu1 %v1247_v33  ;;  %2310 = vst [vmem:[#allocation88_spill] sm:$0xff] %v1806_v19  ;;  %v1808_v33 = vld [vmem:[#allocation8 + $0x2f0] sm:$0xff]  ;;  %v1814_v49 = vld [vmem:[#allocation8 + $0x3f8] sm:$0xff] }
  0x5e   :  { %1250 = vmatprep.subr.bf16.mxu1 %v1249_v48  ;;  %v1812_v30 = vld [vmem:[#allocation8 + $0x3f0] sm:$0xff]  ;;  %2312 = vst [vmem:[#allocation90_spill] sm:$0xff] %v1814_v49  ;;  %v1255_v48 = vpack.c.bf16 %v1806_v19, %v1802_v5  ;;  %v1225_v3 = vpack.c.bf16 %v1810_v16, %v1808_v33  ;;  %v1824_v42 = vld [vmem:[#allocation8 + $0x278] sm:$0xff]  ;;  %v62_v19 = vld [vmem:[#allocation5 + $0x20] sm:$0xff] }
  0x5f   :  { %2311 = vst [vmem:[#allocation89_spill] sm:$0xff] %v1812_v30  ;;  %1220 = vmatpush3.bf16.msra.mxu0 %v1219_v18  ;;  %v1822_v62 = vld [vmem:[#allocation8 + $0x270] sm:$0xff]  ;;  %v1257_v34 = vpack.c.bf16 %v1814_v49, %v1812_v30  ;;  %v1830_v43 = vld [vmem:[#allocation8 + $0x378] sm:$0xff]  ;;  %v1382_v49 = vmov 0   ;;  %v655_v30 = vmul.f32 %v1460_v4, %v1460_v4 }
  0x60   :  { %1222 = vmatprep.subr.bf16.mxu0 %v1221_v52  ;;  %v1828_v18 = vld [vmem:[#allocation8 + $0x370] sm:$0xff]  ;;  %v1227_v52 = vpack.c.bf16 %v1824_v42, %v1822_v62  ;;  %1277 = vset.pattern.permute.xlu0 %v1382_v49  ;;  %v659_v49 = vmul.f32 %v1508_v28, %v1508_v28  ;;  %v664_v28 = vmul.f32 %v1582_v7, %v1582_v7 }
  0x61   :  { %1252 = vmatpush3.bf16.msra.mxu1 %v1251_v50  ;;  %v1259_v50 = vpack.c.bf16 %v1830_v43, %v1828_v18  ;;  %v669_v7 = vmul.f32 %v1632_v56, %v1632_v56 }
  0x62   :  { %1254 = vmatprep.subr.bf16.mxu1 %v1253_v63  ;;  %v64_v63 = vld [vmem:[#allocation5 + $0x30] sm:$0xff] }
  0x63   :  { %1224 = vmatpush3.bf16.msra.mxu0 %v1223_v51  ;;  %v654_v51 = vmul.f32 %v1456_v2, %v1456_v2  ;;  %v660_v2 = vmul.f32 %v1526_v37, %v1526_v37  ;;  %v665_v37 = vmul.f32 %v1584_v8, %v1584_v8  ;;  %v670_v8 = vmul.f32 %v1452_v0, %v1452_v0 }
  0x64   :  { %1226 = vmatprep.subr.bf16.mxu0 %v1225_v3  ;;  %v656_v3 = vmul.f32 %v1480_v14, %v1480_v14  ;;  %v661_v14 = vmul.f32 %v1532_v40, %v1532_v40  ;;  %v666_v40 = vmul.f32 %v1602_v38, %v1602_v38  ;;  %v671_v38 = vmul.f32 %v1454_v1, %v1454_v1 }
  0x65   :  { %1256 = vmatpush3.bf16.msra.mxu1 %v1255_v48  ;;  %v782_v48 = vadd.f32 %v655_v30, %v654_v51  ;;  %v673_v0 = vmul.f32 %v1478_v13, %v1478_v13  ;;  %v678_v13 = vmul.f32 %v1544_v46, %v1544_v46  ;;  %v683_v46 = vmul.f32 %v1594_v25, %v1594_v25 }
  0x66   :  { %1258 = vmatprep.subr.bf16.mxu1 %v1257_v34  ;;  %v657_v34 = vmul.f32 %v1482_v15, %v1482_v15  ;;  %v662_v15 = vmul.f32 %v1558_v53, %v1558_v53  ;;  %v667_v53 = vmul.f32 %v1604_v39, %v1604_v39  ;;  %v992_v39 = vld [vmem:[%s2161_s3] ss:$0 sm:$0xff] }
  0x67   :  { %1228 = vmatpush3.bf16.msra.mxu0 %v1227_v52  ;;  %v783_v52 = vadd.f32 %v782_v48, %v656_v3 }
  0x69   :  { %1260 = vmatpush3.bf16.msra.mxu1 %v1259_v50  ;;  %v784_v50 = vadd.f32 %v783_v52, %v657_v34 }
  0x6a   :  { %406 = vmatmul.mubr.f32.vlgmr.msra.gmra.mrb[2].mxu0 %v62_v19  ;;  %v658_v19 = vmul.f32 %v1506_v27, %v1506_v27  ;;  %v663_v27 = vmul.f32 %v1560_v54, %v1560_v54  ;;  %v668_v54 = vmul.f32 %v1630_v26, %v1630_v26 }
  0x6c   :  { %476 = vmatmul.mubr.f32.vlgmr.msra.gmra.mrb[2].mxu1 %v64_v63  ;;  %v785_v63 = vadd.f32 %v784_v50, %v658_v19 }
  0x6e   :  { %v786_v4 = vadd.f32 %v785_v63, %v659_v49 }
  0x70   :  { %v787_v30 = vadd.f32 %v786_v4, %v660_v2 }
  0x72   :  { %v788_v51 = vadd.f32 %v787_v30, %v661_v14  ;;  %v672_v30 = vmul.f32 %v1474_v11, %v1474_v11  ;;  %v676_v11 = vmul.f32 %v1522_v35, %v1522_v35  ;;  %v681_v35 = vmul.f32 %v1570_v59, %v1570_v59 }
  0x73   :  { %v686_v59 = vmul.f32 %v1470_v9, %v1470_v9  ;;  %v689_v9 = vmul.f32 %v1496_v22, %v1496_v22  ;;  %v692_v22 = vmul.f32 %v1540_v44, %v1540_v44  ;;  %v697_v44 = vmul.f32 %v1590_v17, %v1590_v17  ;;  %v495_v17 = vld [vmem:[%s2162_s4] sm:$0xff] }
  0x74   :  { %v789_v3 = vadd.f32 %v788_v51, %v662_v15 }
  0x76   :  { %v790_v48 = vadd.f32 %v789_v3, %v663_v27 }
  0x78   :  { %v791_v34 = vadd.f32 %v790_v48, %v664_v28  ;;  %v674_v28 = vmul.f32 %v1498_v23, %v1498_v23  ;;  %v679_v23 = vmul.f32 %v1546_v47, %v1546_v47  ;;  %v684_v47 = vmul.f32 %v1616_v61, %v1616_v61 }
  0x79   :  { %v688_v61 = vmul.f32 %v1492_v20, %v1492_v20 }
  0x7a   :  { %v792_v52 = vadd.f32 %v791_v34, %v665_v37  ;;  %v675_v34 = vmul.f32 %v1500_v24, %v1500_v24  ;;  %v680_v24 = vmul.f32 %v1568_v58, %v1568_v58  ;;  %v685_v58 = vmul.f32 %v1618_v60, %v1618_v60 }
  0x7c   :  { %v793_v19 = vadd.f32 %v792_v52, %v666_v40 }
  0x7e   :  { %v794_v50 = vadd.f32 %v793_v19, %v667_v53  ;;  %v677_v53 = vmul.f32 %v1524_v36, %v1524_v36  ;;  %v682_v36 = vmul.f32 %v1592_v21, %v1592_v21  ;;  %v687_v21 = vmul.f32 %v1472_v10, %v1472_v10 }
  0x7f   :  { %v690_v10 = vmul.f32 %v1514_v31, %v1514_v31  ;;  %v694_v31 = vmul.f32 %v1562_v55, %v1562_v55 }
  0x80   :  { %v795_v49 = vadd.f32 %v794_v50, %v668_v54 }
  0x82   :  { %v796_v63 = vadd.f32 %v795_v49, %v669_v7 }
  0x84   :  { %v797_v2 = vadd.f32 %v796_v63, %v670_v8 }
  0x86   :  { %v798_v56 = vadd.f32 %v797_v2, %v671_v38 }
  0x88   :  { %v799_v3 = vadd.f32 %v798_v56, %v672_v30 }
  0x8a   :  { %v800_v48 = vadd.f32 %v799_v3, %v673_v0 }
  0x8c   :  { %v801_v40 = vadd.f32 %v800_v48, %v674_v28  ;;  %v691_v48 = vmul.f32 %v1516_v32, %v1516_v32  ;;  %v695_v32 = vmul.f32 %v1566_v57, %v1566_v57 }
  0x8e   :  { %v802_v52 = vadd.f32 %v801_v40, %v675_v34 }
  0x90   :  { %v803_v19 = vadd.f32 %v802_v52, %v676_v11 }
  0x92   :  { %v804_v54 = vadd.f32 %v803_v19, %v677_v53  ;;  %v696_v19 = vmul.f32 %v1586_v12, %v1586_v12 }
  0x94   :  { %v805_v50 = vadd.f32 %v804_v54, %v678_v13 }
  0x96   :  { %v806_v7 = vadd.f32 %v805_v50, %v679_v23  ;;  %v2313_v23 = vld [vmem:[#allocation31_spill] sm:$0xff] }
  0x98   :  { %v807_v49 = vadd.f32 %v806_v7, %v680_v24  ;;  %v2314_v24 = vld [vmem:[#allocation32_spill] sm:$0xff] }
  0x99   :  { %v699_v55 = vmul.f32 %v2314_v24, %v2314_v24 }
  0x9a   :  { %v808_v8 = vadd.f32 %v807_v49, %v681_v35  ;;  %v2315_v35 = vld [vmem:[#allocation35_spill] sm:$0xff] }
  0x9b   :  { %v700_v57 = vmul.f32 %v2315_v35, %v2315_v35 }
  0x9c   :  { %v809_v63 = vadd.f32 %v808_v8, %v682_v36  ;;  %v2316_v36 = vld [vmem:[#allocation36_spill] sm:$0xff] }
  0x9d   :  { %v701_v12 = vmul.f32 %v2316_v36, %v2316_v36 }
  0x9e   :  { %v810_v38 = vadd.f32 %v809_v63, %v683_v46  ;;  %v2317_v46 = vld [vmem:[#allocation17_spill] sm:$0xff] }
  0x9f   :  { %v702_v63 = vmul.f32 %v2317_v46, %v2317_v46  ;;  %v2334_v46 = vld [vmem:[#allocation42_spill] sm:$0xff] }
  0xa0   :  { %v811_v2 = vadd.f32 %v810_v38, %v684_v47  ;;  %v2318_v38 = vld [vmem:[#allocation18_spill] sm:$0xff] }
 0x11d   :  { %v1025_v4 = vpop.f32.mrb[0].mxu0 }
 0x11e   :  { %v1026_v14 = vpop.f32.mrb[1].mxu0 }
 0x11f   :  { %v1060_v26 = vpop.f32.mrb[0].mxu1  ;;  %v1027_v15 = vadd.f32 %v1026_v14, %v1025_v4  ;;  %v481_v4 = vlaneseq }
 0x120   :  { %v1061_v51 = vpop.f32.mrb[1].mxu1 }
 0x121   :  { %v1062_v27 = vadd.f32 %v1061_v51, %v1060_v26  ;;  %v268_v1 = vadd.f32 %v1027_v15, %v992_v39  ;;  %v812_v39 = vadd.f32 %v811_v2, %v685_v58  ;;  %v1908_v56 = vand.u32 127, %v481_v4 }
 0x122   :  { %v703_v58 = vmul.f32 %v2318_v38, %v2318_v38  ;;  %v2335_v38 = vld [vmem:[#allocation49_spill] sm:$0xff] }
 0x123   :  { %v338_v37 = vadd.f32 %v1062_v27, %v268_v1  ;;  %v813_v14 = vadd.f32 %v812_v39, %v686_v59  ;;  %vm483_vm0 = vcmp.lt.s32.totalorder %v1908_v56, 8  ;;  %v2319_v59 = vld [vmem:[#allocation19_spill] sm:$0xff] }
 0x124   :  { %v704_v39 = vmul.f32 %v2319_v59, %v2319_v59  ;;  %v2336_v59 = vld [vmem:[#allocation50_spill] sm:$0xff] }
 0x125   :  { %v814_v60 = vadd.f32 %v813_v14, %v687_v21  ;;  %v2320_v14 = vld [vmem:[#allocation20_spill] sm:$0xff] }
 0x127   :  { %v815_v0 = vadd.f32 %v814_v60, %v688_v61 }
 0x129   :  { %v816_v1 = vadd.f32 %v815_v0, %v689_v9  ;;  %v2323_v9 = vld [vmem:[#allocation23_spill] sm:$0xff] }
 0x12a   :  { %v708_v0 = vmul.f32 %v2323_v9, %v2323_v9 }
 0x12b   :  { %v817_v20 = vadd.f32 %v816_v1, %v690_v10  ;;  %v2324_v10 = vld [vmem:[#allocation24_spill] sm:$0xff] }
 0x12c   :  { %v709_v1 = vmul.f32 %v2324_v10, %v2324_v10 }
 0x12d   :  { %v818_v40 = vadd.f32 %v817_v20, %v691_v48  ;;  %v2325_v48 = vld [vmem:[#allocation25_spill] sm:$0xff] }
 0x12e   :  { %v710_v20 = vmul.f32 %v2325_v48, %v2325_v48 }
 0x12f   :  { %v819_v11 = vadd.f32 %v818_v40, %v692_v22  ;;  %v2326_v40 = vld [vmem:[#allocation26_spill] sm:$0xff] }
 0x13d   :  { %v1095_v26 = vpop.f32.mrb[2].mxu0 }
 0x13e   :  { %v1096_v25 = vpop.f32.mrb[3].mxu0 }
 0x13f   :  { %v1130_v30 = vpop.f32.mrb[2].mxu1  ;;  %v1097_v15 = vadd.f32 %v1096_v25, %v1095_v26  ;;  %v705_v26 = vmul.f32 %v2320_v14, %v2320_v14  ;;  %v2337_v14 = vld [vmem:[#allocation57_spill] sm:$0xff] }
 0x140   :  { %v1131_v51 = vpop.f32.mrb[3].mxu1 }
 0x141   :  { %v1132_v27 = vadd.f32 %v1131_v51, %v1130_v30  ;;  %v408_v3 = vadd.f32 %v1097_v15, %v338_v37  ;;  %v693_v37 = vmul.f32 %v1542_v45, %v1542_v45  ;;  %v698_v45 = vmul.f32 %v2313_v23, %v2313_v23  ;;  %v2321_v30 = vld [vmem:[#allocation21_spill] sm:$0xff]  ;;  %v2322_v15 = vld [vmem:[#allocation22_spill] sm:$0xff] }
 0x142   :  { %v706_v61 = vmul.f32 %v2321_v30, %v2321_v30  ;;  %v707_v51 = vmul.f32 %v2322_v15, %v2322_v15  ;;  %v2338_v30 = vld [vmem:[#allocation58_spill] sm:$0xff]  ;;  %v724_v15 = vmul.f32 %v1726_v6, %v1726_v6 }
 0x143   :  { %v478_v28 = vadd.f32 %v1132_v27, %v408_v3  ;;  %v820_v52 = vadd.f32 %v819_v11, %v693_v37  ;;  %v711_v37 = vmul.f32 %v2326_v40, %v2326_v40 }
 0x145   :  { %v1919_v34 = vsel %vm483_vm0, %v478_v28, -1e+30  ;;  %v821_v53 = vadd.f32 %v820_v52, %v694_v31  ;;  %v2327_v31 = vld [vmem:[#allocation27_spill] sm:$0xff] }
 0x146   :  { %485 = vmax.xlane.f32.xlu0 %v1919_v34  ;;  %v712_v52 = vmul.f32 %v2327_v31, %v2327_v31 }
 0x147   :  { %v822_v13 = vadd.f32 %v821_v53, %v695_v32  ;;  %v2328_v53 = vld [vmem:[#allocation28_spill] sm:$0xff] }
 0x149   :  { %v823_v54 = vadd.f32 %v822_v13, %v696_v19  ;;  %v713_v19 = vmul.f32 %v2328_v53, %v2328_v53  ;;  %v731_v53 = vmul.f32 %v1800_v29, %v1800_v29 }
 0x14b   :  { %v824_v50 = vadd.f32 %v823_v54, %v697_v44  ;;  %v2329_v44 = vld [vmem:[#allocation29_spill] sm:$0xff] }
 0x14c   :  { %v714_v54 = vmul.f32 %v2329_v44, %v2329_v44 }
 0x14d   :  { %v825_v7 = vadd.f32 %v824_v50, %v698_v45  ;;  %v2330_v45 = vld [vmem:[#allocation30_spill] sm:$0xff] }
 0x14e   :  { %v715_v50 = vmul.f32 %v2330_v45, %v2330_v45  ;;  %v2344_v45 = vld [vmem:[#allocation37_spill] sm:$0xff] }
 0x14f   :  { %v826_v49 = vadd.f32 %v825_v7, %v699_v55  ;;  %v2331_v55 = vld [vmem:[#allocation33_spill] sm:$0xff] }
 0x150   :  { %v716_v7 = vmul.f32 %v2331_v55, %v2331_v55  ;;  %v2345_v55 = vld [vmem:[#allocation38_spill] sm:$0xff] }
 0x151   :  { %v827_v8 = vadd.f32 %v826_v49, %v700_v57  ;;  %v2332_v57 = vld [vmem:[#allocation34_spill] sm:$0xff] }
 0x152   :  { %v717_v49 = vmul.f32 %v2332_v57, %v2332_v57 }
 0x153   :  { %v828_v47 = vadd.f32 %v827_v8, %v701_v12  ;;  %v2333_v12 = vld [vmem:[#allocation41_spill] sm:$0xff] }
 0x154   :  { %v718_v8 = vmul.f32 %v2333_v12, %v2333_v12  ;;  %v2348_v12 = vld [vmem:[#allocation53_spill] sm:$0xff] }
 0x155   :  { %v829_v2 = vadd.f32 %v828_v47, %v702_v63  ;;  %v719_v63 = vmul.f32 %v2334_v46, %v2334_v46 }
 0x157   :  { %v830_v21 = vadd.f32 %v829_v2, %v703_v58  ;;  %v720_v58 = vmul.f32 %v2335_v38, %v2335_v38 }
 0x159   :  { %v831_v25 = vadd.f32 %v830_v21, %v704_v39  ;;  %v721_v39 = vmul.f32 %v2336_v59, %v2336_v59 }
 0x15b   :  { %v832_v60 = vadd.f32 %v831_v25, %v705_v26  ;;  %v722_v26 = vmul.f32 %v2337_v14, %v2337_v14 }
 0x15c   :  { %497 = vperm.xlu0 %1277, %v495_v17  }
 0x15d   :  { %v833_v27 = vadd.f32 %v832_v60, %v706_v61  ;;  %v723_v61 = vmul.f32 %v2338_v30, %v2338_v30 }
 0x15f   :  { %v834_v3 = vadd.f32 %v833_v27, %v707_v51  ;;  %v2339_v27 = vld [vmem:[#allocation65_spill] sm:$0xff] }
 0x160   :  { %v725_v9 = vmul.f32 %v2339_v27, %v2339_v27  ;;  %v2355_v27 = vld [vmem:[#allocation77_spill] sm:$0xff] }
 0x161   :  { %v835_v28 = vadd.f32 %v834_v3, %v708_v0  ;;  %v2340_v3 = vld [vmem:[#allocation72_spill] sm:$0xff] }
 0x162   :  { %v726_v10 = vmul.f32 %v2340_v3, %v2340_v3  ;;  %v2356_v3 = vld [vmem:[#allocation84_spill] sm:$0xff] }
 0x163   :  { %v836_v22 = vadd.f32 %v835_v28, %v709_v1  ;;  %v2341_v28 = vld [vmem:[#allocation73_spill] sm:$0xff] }
 0x164   :  { %v727_v48 = vmul.f32 %v2341_v28, %v2341_v28  ;;  %v2357_v28 = vld [vmem:[#allocation85_spill] sm:$0xff] }
 0x165   :  { %v837_v11 = vadd.f32 %v836_v22, %v710_v20  ;;  %v2342_v22 = vld [vmem:[#allocation80_spill] sm:$0xff] }
 0x166   :  { %v728_v40 = vmul.f32 %v2342_v22, %v2342_v22  ;;  %v748_v22 = vmul.f32 %v1808_v33, %v1808_v33 }
 0x167   :  { %v838_v32 = vadd.f32 %v837_v11, %v711_v37  ;;  %v2343_v11 = vld [vmem:[#allocation81_spill] sm:$0xff] }
 0x168   :  { %v729_v6 = vmul.f32 %v2343_v11, %v2343_v11 }
 0x169   :  { %v839_v13 = vadd.f32 %v838_v32, %v712_v52  ;;  %v730_v52 = vmul.f32 %v1798_v41, %v1798_v41  ;;  %v735_v41 = vmul.f32 %v2345_v55, %v2345_v55  ;;  %v2363_v55 = vld [vmem:[#allocation60_spill] sm:$0xff] }
 0x16b   :  { %v840_v23 = vadd.f32 %v839_v13, %v713_v19  ;;  %v732_v13 = vmul.f32 %v1822_v62, %v1822_v62 }
 0x16d   :  { %v841_v24 = vadd.f32 %v840_v23, %v714_v54  ;;  %v733_v54 = vmul.f32 %v1824_v42, %v1824_v42  ;;  %v738_v42 = vmul.f32 %v2348_v12, %v2348_v12  ;;  %v2366_v12 = vld [vmem:[#allocation74_spill] sm:$0xff] }
 0x16f   :  { %v842_v35 = vadd.f32 %v841_v24, %v715_v50  ;;  %v734_v50 = vmul.f32 %v2344_v45, %v2344_v45 }
 0x171   :  { %v843_v36 = vadd.f32 %v842_v35, %v716_v7  ;;  %v2346_v35 = vld [vmem:[#allocation45_spill] sm:$0xff] }
 0x172   :  { %v736_v29 = vmul.f32 %v2346_v35, %v2346_v35  ;;  %v2364_v35 = vld [vmem:[#allocation66_spill] sm:$0xff] }
 0x173   :  { %v844_v17 = vadd.f32 %v843_v36, %v717_v49  ;;  %v2347_v49 = vld [vmem:[#allocation46_spill] sm:$0xff] }
 0x174   :  { %v737_v62 = vmul.f32 %v2347_v49, %v2347_v49  ;;  %v2365_v49 = vld [vmem:[#allocation67_spill] sm:$0xff] }
 0x175   :  { %v845_v47 = vadd.f32 %v844_v17, %v718_v8  ;;  %v2349_v17 = vld [vmem:[#allocation54_spill] sm:$0xff] }
 0x176   :  { %v739_v46 = vmul.f32 %v2349_v17, %v2349_v17  ;;  %v2367_v17 = vld [vmem:[#allocation75_spill] sm:$0xff] }
 0x177   :  { %v846_v2 = vadd.f32 %v845_v47, %v719_v63  ;;  %v2350_v47 = vld [vmem:[#allocation61_spill] sm:$0xff] }
 0x178   :  { %v740_v38 = vmul.f32 %v2350_v47, %v2350_v47  ;;  %v2368_v47 = vld [vmem:[#allocation82_spill] sm:$0xff] }
 0x179   :  { %v847_v21 = vadd.f32 %v846_v2, %v720_v58  ;;  %v2351_v2 = vld [vmem:[#allocation62_spill] sm:$0xff] }
 0x17a   :  { %v741_v59 = vmul.f32 %v2351_v2, %v2351_v2  ;;  %v2369_v2 = vld [vmem:[#allocation83_spill] sm:$0xff] }
 0x17b   :  { %v848_v25 = vadd.f32 %v847_v21, %v721_v39  ;;  %v2352_v21 = vld [vmem:[#allocation68_spill] sm:$0xff] }
 0x17c   :  { %v742_v14 = vmul.f32 %v2352_v21, %v2352_v21  ;;  %v762_v21 = vmul.f32 %v1802_v5, %v1802_v5 }
 0x17d   :  { %v849_v60 = vadd.f32 %v848_v25, %v722_v26  ;;  %v2353_v25 = vld [vmem:[#allocation69_spill] sm:$0xff] }
 0x17e   :  { %v743_v30 = vmul.f32 %v2353_v25, %v2353_v25 }
 0x17f   :  { %v850_v51 = vadd.f32 %v849_v60, %v723_v61  ;;  %v2354_v60 = vld [vmem:[#allocation76_spill] sm:$0xff] }
 0x181   :  { %v851_v0 = vadd.f32 %v850_v51, %v724_v15  ;;  %v744_v15 = vmul.f32 %v2354_v60, %v2354_v60 }
 0x183   :  { %v852_v1 = vadd.f32 %v851_v0, %v725_v9  ;;  %v745_v9 = vmul.f32 %v2355_v27, %v2355_v27 }
 0x185   :  { %v853_v20 = vadd.f32 %v852_v1, %v726_v10  ;;  %v746_v10 = vmul.f32 %v2356_v3, %v2356_v3 }
 0x187   :  { %v854_v37 = vadd.f32 %v853_v20, %v727_v48  ;;  %v747_v48 = vmul.f32 %v2357_v28, %v2357_v28 }
 0x189   :  { %v855_v31 = vadd.f32 %v854_v37, %v728_v40  ;;  %v749_v37 = vmul.f32 %v1810_v16, %v1810_v16 }
 0x18b   :  { %v856_v32 = vadd.f32 %v855_v31, %v729_v6  ;;  %v2358_v6 = vld [vmem:[#allocation43_spill] sm:$0xff] }
 0x18c   :  { %v750_v31 = vmul.f32 %v2358_v6, %v2358_v6 }
 0x18d   :  { %v857_v19 = vadd.f32 %v856_v32, %v730_v52  ;;  %v2359_v32 = vld [vmem:[#allocation44_spill] sm:$0xff] }
 0x18f   :  { %v858_v44 = vadd.f32 %v857_v19, %v731_v53  ;;  %v751_v53 = vmul.f32 %v2359_v32, %v2359_v32 }
 0x191   :  { %v859_v23 = vadd.f32 %v858_v44, %v732_v13  ;;  %v2360_v13 = vld [vmem:[#allocation51_spill] sm:$0xff] }
 0x192   :  { %v752_v44 = vmul.f32 %v2360_v13, %v2360_v13 }
 0x193   :  { %v860_v24 = vadd.f32 %v859_v23, %v733_v54  ;;  %v2361_v23 = vld [vmem:[#allocation52_spill] sm:$0xff] }
 0x194   :  { %v753_v33 = vmul.f32 %v2361_v23, %v2361_v23 }
 0x195   :  { %v861_v7 = vadd.f32 %v860_v24, %v734_v50  ;;  %v2362_v50 = vld [vmem:[#allocation59_spill] sm:$0xff] }
 0x196   :  { %v754_v16 = vmul.f32 %v2362_v50, %v2362_v50 }
 0x197   :  { %v862_v57 = vadd.f32 %v861_v7, %v735_v41  ;;  %v755_v41 = vmul.f32 %v2363_v55, %v2363_v55 }
 0x199   :  { %v863_v36 = vadd.f32 %v862_v57, %v736_v29  ;;  %v756_v29 = vmul.f32 %v2364_v35, %v2364_v35 }
 0x19b   :  { %v864_v8 = vadd.f32 %v863_v36, %v737_v62  ;;  %v757_v62 = vmul.f32 %v2365_v49, %v2365_v49  ;;  %v1383_v49 = vmov 0.0  }
 0x19c   :  { %56 = vst.msk [vmem:[#allocation2] sm:$0xff] %vm55_vm2, %v1383_v49  ;;  %57 = vst.msk [vmem:[#allocation3] sm:$0xff] %vm55_vm2, %v1383_v49 }
 0x19d   :  { %v865_v63 = vadd.f32 %v864_v8, %v738_v42  ;;  %v758_v42 = vmul.f32 %v2366_v12, %v2366_v12 }
 0x19f   :  { %v866_v58 = vadd.f32 %v865_v63, %v739_v46  ;;  %v759_v46 = vmul.f32 %v2367_v17, %v2367_v17 }
 0x1a1   :  { %v867_v39 = vadd.f32 %v866_v58, %v740_v38  ;;  %v760_v38 = vmul.f32 %v2368_v47, %v2368_v47 }
 0x1a3   :  { %v868_v26 = vadd.f32 %v867_v39, %v741_v59  ;;  %v761_v59 = vmul.f32 %v2369_v2, %v2369_v2 }
 0x1a5   :  { %v869_v61 = vadd.f32 %v868_v26, %v742_v14 }
 0x1a7   :  { %v870_v51 = vadd.f32 %v869_v61, %v743_v30  ;;  %v2370_v30 = vld [vmem:[#allocation88_spill] sm:$0xff] }
 0x1a8   :  { %v763_v61 = vmul.f32 %v2370_v30, %v2370_v30 }
 0x1a9   :  { %v871_v0 = vadd.f32 %v870_v51, %v744_v15  ;;  %v764_v51 = vmul.f32 %v1828_v18, %v1828_v18  ;;  %v2374_v18 = vld [vmem:[#allocation48_spill] sm:$0xff] }
 0x1ab   :  { %v872_v1 = vadd.f32 %v871_v0, %v745_v9  ;;  %v765_v9 = vmul.f32 %v1830_v43, %v1830_v43  ;;  %v2371_v0 = vld [vmem:[#allocation39_spill] sm:$0xff] }
 0x1ac   :  { %v766_v3 = vmul.f32 %v2371_v0, %v2371_v0  ;;  %v2375_v43 = vld [vmem:[#allocation55_spill] sm:$0xff] }
 0x1ad   :  { %v873_v20 = vadd.f32 %v872_v1, %v746_v10  ;;  %v2372_v1 = vld [vmem:[#allocation40_spill] sm:$0xff] }
 0x1ae   :  { %v767_v28 = vmul.f32 %v2372_v1, %v2372_v1 }
 0x1af   :  { %v874_v40 = vadd.f32 %v873_v20, %v747_v48  ;;  %v2373_v20 = vld [vmem:[#allocation47_spill] sm:$0xff] }
 0x1b1   :  { %v875_v11 = vadd.f32 %v874_v40, %v748_v22  ;;  %v768_v22 = vmul.f32 %v2373_v20, %v2373_v20 }
 0x1b3   :  { %v876_v52 = vadd.f32 %v875_v11, %v749_v37  ;;  %v769_v11 = vmul.f32 %v2374_v18, %v2374_v18 }
 0x1b5   :  { %v877_v19 = vadd.f32 %v876_v52, %v750_v31  ;;  %v770_v52 = vmul.f32 %v2375_v43, %v2375_v43 }
 0x1b7   :  { %v878_v54 = vadd.f32 %v877_v19, %v751_v53  ;;  %v2376_v53 = vld [vmem:[#allocation56_spill] sm:$0xff] }
 0x1b8   :  { %v771_v19 = vmul.f32 %v2376_v53, %v2376_v53 }
 0x1b9   :  { %v879_v45 = vadd.f32 %v878_v54, %v752_v44  ;;  %v2377_v54 = vld [vmem:[#allocation63_spill] sm:$0xff] }
 0x1ba   :  { %v772_v23 = vmul.f32 %v2377_v54, %v2377_v54 }
 0x1bb   :  { %v880_v24 = vadd.f32 %v879_v45, %v753_v33  ;;  %v2378_v45 = vld [vmem:[#allocation64_spill] sm:$0xff] }
 0x1bc   :  { %v773_v50 = vmul.f32 %v2378_v45, %v2378_v45 }
 0x1bd   :  { %v881_v7 = vadd.f32 %v880_v24, %v754_v16  ;;  %v2379_v24 = vld [vmem:[#allocation70_spill] sm:$0xff] }
 0x1be   :  { %v774_v55 = vmul.f32 %v2379_v24, %v2379_v24 }
 0x1bf   :  { %v882_v57 = vadd.f32 %v881_v7, %v755_v41  ;;  %v2380_v41 = vld [vmem:[#allocation71_spill] sm:$0xff] }
 0x1c0   :  { %v775_v7 = vmul.f32 %v2380_v41, %v2380_v41 }
 0x1c1   :  { %v883_v36 = vadd.f32 %v882_v57, %v756_v29  ;;  %v2381_v29 = vld [vmem:[#allocation78_spill] sm:$0xff] }
 0x1c3   :  { %v884_v8 = vadd.f32 %v883_v36, %v757_v62  ;;  %v2382_v62 = vld [vmem:[#allocation79_spill] sm:$0xff] }
 0x1c4   :  { %v777_v36 = vmul.f32 %v2382_v62, %v2382_v62 }
 0x1c5   :  { %v885_v63 = vadd.f32 %v884_v8, %v758_v42  ;;  %v2383_v42 = vld [vmem:[#allocation86_spill] sm:$0xff] }
 0x1c6   :  { %v778_v8 = vmul.f32 %v2383_v42, %v2383_v42 }
 0x1c7   :  { %v886_v58 = vadd.f32 %v885_v63, %v759_v46  ;;  %v2384_v46 = vld [vmem:[#allocation87_spill] sm:$0xff] }
 0x1c8   :  { %v779_v63 = vmul.f32 %v2384_v46, %v2384_v46 }
 0x1c9   :  { %v887_v39 = vadd.f32 %v886_v58, %v760_v38  ;;  %v2385_v38 = vld [vmem:[#allocation89_spill] sm:$0xff] }
 0x1ca   :  { %v780_v58 = vmul.f32 %v2385_v38, %v2385_v38 }
 0x1cb   :  { %v888_v14 = vadd.f32 %v887_v39, %v761_v59  ;;  %v2386_v59 = vld [vmem:[#allocation90_spill] sm:$0xff] }
 0x1cc   :  { %v781_v39 = vmul.f32 %v2386_v59, %v2386_v59 }
 0x1cd   :  { %v889_v60 = vadd.f32 %v888_v14, %v762_v21 }
 0x1cf   :  { %v890_v27 = vadd.f32 %v889_v60, %v763_v61  ;;  %v505_v60 = vshrl.u32 %v481_v4, 7 }
 0x1d1   :  { %v891_v5 = vadd.f32 %v890_v27, %v764_v51  ;;  %vm508_vm4 = vcmp.lt.s32.totalorder %v505_v60, 2  ;;  %v518_v27 = vld [vmem:[#allocation3] sm:$0xff] }
 0x1d3   :  { %v2067_v26 = vpop.xlane.xlu0 %485  ;;  %v892_v10 = vadd.f32 %v891_v5, %v765_v9 }
 0x1d4   :  { %v487_v25 = vsub.f32 %v1919_v34, %v2067_v26 }
 0x1d5   :  { %v893_v48 = vadd.f32 %v892_v10, %v766_v3 }
 0x1d6   :  { %v488_v15 = vmul.f32 1.442695, %v487_v25  ;;  %v653_v25 = vld [vmem:[%s2161_s3] sm:$0x1] }
 0x1d7   :  { %v894_v40 = vadd.f32 %v893_v48, %v767_v28  ;;  %v918_v30 = vmul.f32 %v653_v25, %v653_v25  ;;  %v514_v28 = vld [vmem:[#allocation2] sm:$0xff] }
 0x1d8   :  { %1278 = vpow2.f32 %v488_v15 }
 0x1d9   :  { %v895_v6 = vadd.f32 %v894_v40, %v768_v22  ;;  %v920_v61 = vsel %vm919_vm3, %v918_v30, 0.0 }
 0x1db   :  { %v498_v37 = vpop.permute.xlu0 %497  ;;  %v896_v32 = vadd.f32 %v895_v6, %v769_v11 }
 0x1dc   :  { %vm499_vm1 = vcmp.eq.s32.totalorder %v1908_v56, %v498_v37 }
 0x1dd   :  { %v897_v13 = vadd.f32 %v896_v32, %v770_v52  ;;  %v500_v44 = vsel %vm499_vm1, %v1919_v34, 0.0  ;;  %v776_v34 = vmul.f32 %v2381_v29, %v2381_v29 }
 0x1df   :  { %v898_v33 = vadd.f32 %v897_v13, %v771_v19 }
 0x1e1   :  { %v899_v16 = vadd.f32 %v898_v33, %v772_v23 }
 0x1e2   :  { %v1279_v31 = vpop.eup %1278 }
 0x1e3   :  { %490 = vadd.xlane.f32.xlu1 %v1279_v31  ;;  %v900_v56 = vadd.f32 %v899_v16, %v773_v50 }
 0x1e5   :  { %v901_v35 = vadd.f32 %v900_v56, %v774_v55 }
 0x1e7   :  { %501 = vadd.xlane.f32.xlu1 %v500_v44  ;;  %v902_v57 = vadd.f32 %v901_v35, %v775_v7 }
 0x1e9   :  { %v903_v12 = vadd.f32 %v902_v57, %v776_v34 }
 0x1eb   :  { %v904_v17 = vadd.f32 %v903_v12, %v777_v36 }
 0x1ed   :  { %v905_v47 = vadd.f32 %v904_v17, %v778_v8 }
 0x1ef   :  { %v906_v2 = vadd.f32 %v905_v47, %v779_v63 }
 0x1f1   :  { %v907_v21 = vadd.f32 %v906_v2, %v780_v58 }
 0x1f3   :  { %v908_v14 = vadd.f32 %v907_v21, %v781_v39 }
 0x1f5   :  { %909 = vadd.xlane.f32.xlu1 %v908_v14 }
 0x1f9   :  { %921 = vadd.xlane.f32.xlu1 %v920_v61 }
 0x270   :  { %v491_v15 = vpop.xlane.xlu1 %490 }
 0x271   :  { %1280 = vlog2.f32 %v491_v15 }
 0x274   :  { %v502_v51 = vpop.xlane.xlu1 %501 }
 0x275   :  { %vm511_vm5 = vcmp.ge.f32.partialorder %v502_v51, %v2067_v26 }
 0x276   :  { %vm512_vm6 = vmand %vm508_vm4, %vm511_vm5 }
 0x277   :  { %v513_v9 = vsel %vm512_vm6, 1.0, %v1383_v49 }
 0x278   :  { %v519_v5 = vadd.f32 %v518_v27, %v513_v9 }
 0x27a   :  { %520 = vst.msk [vmem:[#allocation3] sm:$0xff] %vm55_vm2, %v519_v5 }
 0x27b   :  { %v1281_v0 = vpop.eup %1280 }
 0x27c   :  { %v493_v3 = vmul.f32 0.6931472, %v1281_v0 }
 0x27e   :  { %v494_v10 = vadd.f32 %v493_v3, %v2067_v26 }
 0x280   :  { %v509_v1 = vsub.f32 %v494_v10, %v502_v51 }
 0x281   :  { %v946_v6 = vld [vmem:[#allocation3] sm:$0xff] }
 0x282   :  { %v510_v48 = vsel %vm508_vm4, %v509_v1, 0.0  ;;  %v910_v20 = vpop.xlane.xlu1 %909  ;;  %v947_v26 = vsel %vm55_vm2, %v946_v6, 0.0 }
 0x283   :  { %v515_v4 = vadd.f32 %v514_v28, %v510_v48  ;;  %v911_v22 = vrot.slane %v910_v20, 4 }
 0x285   :  { %517 = vst.msk [vmem:[#allocation2] sm:$0xff] %vm55_vm2, %v515_v4  ;;  %v912_v37 = vadd.f32 %v911_v22, %v910_v20 }
 0x286   :  { %v922_v11 = vpop.xlane.xlu1 %921 }
 0x287   :  { %v913_v31 = vrot.slane %v912_v37, 2  ;;  %v923_v43 = vrot.slane %v922_v11, 4 }
 0x289   :  { %v924_v52 = vadd.f32 %v923_v43, %v922_v11  ;;  %v914_v32 = vadd.f32 %v913_v31, %v912_v37 }
 0x28b   :  { %v925_v53 = vrot.slane %v924_v52, 2  ;;  %v915_v19 = vrot.slane %v914_v32, 1 }
 0x28c   :  { %v931_v40 = vld [vmem:[#allocation2] sm:$0xff] }
 0x28d   :  { %v932_v18 = vsel %vm55_vm2, %v931_v40, 0.0  ;;  %v916_v13 = vadd.f32 %v915_v19, %v914_v32  ;;  %v926_v44 = vadd.f32 %v925_v53, %v924_v52 }
 0x28e   :  { %933 = vadd.xlane.f32.xlu1 %v932_v18 }
 0x28f   :  { %1261 = vpush %v916_v13  ;;  %v927_v54 = vrot.slane %v926_v44, 1 }
 0x291   :  { %v928_v23 = vadd.f32 %v927_v54, %v926_v44 }
 0x292   :  { %948 = vadd.xlane.f32.xlu1 %v947_v26 }
 0x293   :  { %1263 = vpush %v928_v23 }
 0x2c0   :  { %s1262_s3 = spop %1261 }
 0x2c4   :  { %s1264_s26 = spop %1263 }
 0x2c5   :  { %s930_s27 = sadd.f32 %s1264_s26, %s1262_s3 }
 0x2c7   :  { %s944_s7 = smul.f32 %s943_s30, %s930_s27 }
 0x31b   :  { %v934_v33 = vpop.xlane.xlu1 %933 }
 0x31c   :  { %v935_v45 = vrot.slane %v934_v33, 4 }
 0x31e   :  { %v936_v50 = vadd.f32 %v935_v45, %v934_v33 }
 0x31f   :  { %v949_v16 = vpop.xlane.xlu1 %948 }
 0x320   :  { %v937_v24 = vrot.slane %v936_v50, 2  ;;  %v950_v55 = vrot.slane %v949_v16, 4 }
 0x322   :  { %v951_v56 = vadd.f32 %v950_v55, %v949_v16  ;;  %v938_v41 = vadd.f32 %v937_v24, %v936_v50 }
 0x324   :  { %v952_v7 = vrot.slane %v951_v56, 2  ;;  %v939_v35 = vrot.slane %v938_v41, 1 }
 0x326   :  { %v953_v29 = vadd.f32 %v952_v7, %v951_v56  ;;  %v940_v34 = vadd.f32 %v939_v35, %v938_v41 }
 0x328   :  { %1265 = vpush %v940_v34  ;;  %v954_v57 = vrot.slane %v953_v29, 1 }
 0x32a   :  { %v955_v49 = vadd.f32 %v954_v57, %v953_v29 }
 0x32c   :  { %1267 = vpush %v955_v49 }
 0x359   :  { %s1266_s8 = spop %1265 }
 0x35a   :  { %s942_s9 = smul.f32 0.5, %s1266_s8 }
 0x35c   :  { %s945_s12 = sadd.f32 %s944_s7, %s942_s9 }
 0x35d   :  { %s1268_s15 = spop %1267 }
 0x35e   :  { %s957_s16 = smul.f32 0.5, %s1268_s15  ;;  %v958_v62 = vstv %s945_s12 }
 0x35f   :  { %959 = vst [vmem:[#allocation10] sm:$0x1] %v958_v62 }
 0x360   :  { %v960_v36 = vstv %s957_s16 }
 0x361   :  { %1337 = shalt.err (!%p1334_p6)
}
 0x362   :  { %s1338_s19 = scalar_lea.hbm %s2163_s5, 16 }
 0x363   :  { %p1339_p7 = scmp.ne.s32.totalorder %s2163_s5, %s1338_s19  ;;  %p1342_p8 = scmp.lt.u32.totalorder %s1338_s19, %s2163_s5 }
 0x365   :  { %p1344_p9 = pnand %p1342_p8, %p1339_p7 }
 0x367   :  { %1347 = shalt.err (!%p1344_p9)
}
 0x368   :  { %971 = dma.vmem_to_hbm [thread:$0]  %s969_s11, 16, %s2163_s5, [#allocation7]   ;;  %961 = vst [vmem:[#allocation11] sm:$0x1] %v960_v36 }
 0x369   :  { %s1348_s4 = scalar_lea.vmem %s2126_s14, 16  ;;  %s1352_s25 = scalar_lea.vmem %s2126_s14, 32 }
 0x36a   :  { %p1349_p10 = scmp.ne.s32.totalorder %s2126_s14, %s1348_s4  ;;  %p1353_p11 = scmp.lt.s32.totalorder %s2126_s14, %s2126_s14 }
 0x36b   :  { %p1354_p12 = scmp.lt.s32.totalorder %s1352_s25, %s1348_s4 }
 0x36d   :  { %p1355_p13 = por %p1354_p12, %p1353_p11 }
 0x36f   :  { %p1356_p0 = pnand %p1355_p13, %p1349_p10 }
 0x371   :  { %1359 = shalt.err (!%p1356_p0)
}
 0x372   :  { %s1360_s27 = scalar_lea.hbm %s2164_s6, 16 }
 0x373   :  { %p1361_p1 = scmp.ne.s32.totalorder %s2164_s6, %s1360_s27  ;;  %p1364_p2 = scmp.lt.u32.totalorder %s1360_s27, %s2164_s6 }
 0x375   :  { %p1366_p3 = pnand %p1364_p2, %p1361_p1 }
 0x377   :  { %1369 = shalt.err (!%p1366_p3)
}
 0x378   :  { %981 = dma.vmem_to_hbm [thread:$0]  %s2126_s14, 16, %s2164_s6, [#allocation12]  }
 0x379   :  { %1374 = dma.done.wait [#allocation7], 16  }
 0x37a   :  { %1375 = vsyncadd [#allocation7], 4294967280 }
 0x37b   :  { %1376 = dma.done.wait [#allocation12], 16  }
 0x37c   :  { %1377 = vsyncadd [#allocation12], 4294967280 }
 0x37d   :  { %988 = vsyncpa [#allocation6], 1 }
 0x37e   :  { %989 = vsyncpa [#allocation9], 1 }
 0x37f   :  { %990 = vsyncpa [#allocation7], 1 }
 0x380   :  { %991 = vsyncpa [#allocation12], 1 }

</bundles_post_ra>
